<compile_context>
chip_gen: v6e
topology: v6e:2x2x1
jax: 0.10.0
libtpu: 0.0.40
codegen_flags: <defaults>
</compile_context>

<pallas_src>
import math

import jax
import jax.numpy as jnp
from jax import lax
from jax.experimental import pallas as pl
from jax.experimental.pallas import tpu as pltpu


# ----------------------------- Pallas kernel --------------------------------

def make_fused_rnn_kernel(seq_len, batch_p, hidden, vocab_p):
    """Whole forward pass (input proj + RNN recurrence + output Linear) in one kernel."""
    SB = seq_len * batch_p

    def kernel(ids_ref,     # VMEM (S*Bp, 1) int32 time-major token ids (-1 = pad row)
               h0_ref,      # VMEM (Bp, H) f32
               wih_ref,     # VMEM (Vp, H) f32  == W_ih^T (zero-padded rows)
               whh_ref,     # VMEM (H, H) f32   == W_hh^T
               brnn_ref,    # VMEM (1, H) f32   == b_ih + b_hh
               wd_ref,      # VMEM (H, Vp) f32  == W_dense^T (zero-padded cols)
               bd_ref,      # VMEM (1, Vp) f32  (zero-padded)
               out_ref,     # VMEM (S*Bp, Vp) f32 logits
               hlast_ref,   # VMEM (Bp, H) f32 final hidden state
               xall_ref):   # VMEM scratch (S*Bp, H) f32 -- per-step input projections
        # --- Input projection for ALL timesteps at once (off the serial chain). ---
        # one_hot(ids) @ W_ih^T + (b_ih + b_hh).  Padded / out-of-range ids produce an
        # all-zero one-hot row, so there is no bounds-check concern.
        onehot = (ids_ref[...] ==
                  lax.broadcasted_iota(jnp.int32, (SB, vocab_p), 1)
                  ).astype(jnp.float32)
        xall_ref[...] = (jnp.dot(onehot, wih_ref[...],
                                 preferred_element_type=jnp.float32)
                         + brnn_ref[...])

        # --- Recurrence: only (Bp,H)@(H,H) + tanh sits on the critical path. ---
        h = h0_ref[...]                      # (Bp, H) carried in vregs (2 vregs)
        hs = []
        for t in range(seq_len):             # small static trip count: fully unrolled
            x_t = xall_ref[t * batch_p:(t + 1) * batch_p, :]   # static, tile-aligned
            h = jnp.tanh(x_t + jnp.dot(h, whh_ref[...],
                                       preferred_element_type=jnp.float32))
            hs.append(h)
        # TODO(synk): if seq_len grows beyond ~32, switch to lax.fori_loop with a
        # tile-aligned Y writeback to keep code size / vreg live ranges bounded.

        # Final hidden state written exactly once.
        hlast_ref[...] = h

        # --- Fused output projection: one lane-dense matmul + a single full store. ---
        # Rows ordered [t0 b0..bBp-1, t1 ...] == PyTorch's Y.view(-1, H) (time-major).
        y_all = jnp.concatenate(hs, axis=0)                    # (S*Bp, H)
        out_ref[...] = (jnp.dot(y_all, wd_ref[...],
                                preferred_element_type=jnp.float32)
                        + bd_ref[...])

    return kernel


# ------------------------------ Wrapper --------------------------------------

def _round_up(x, m):
    return (x + m - 1) // m * m


def rnn_model_forward(inputs, state, params, vocab_size):
    """Full RNNModel.forward.

    inputs: [batch, seq] int; state: [1, batch, hidden] or None.
    Returns (logits [seq*batch, vocab], new_state [1, batch, hidden]).
    """
    B, S = inputs.shape
    H = params["w_hh_t"].shape[0]
    V = vocab_size
    Bp = _round_up(B, 8)      # sublane-aligned batch
    Vp = _round_up(V, 128)    # lane-dense vocab for one-hot / logits

    # Time-major flattened token ids; padded batch rows get id -1 -> all-zero one-hot.
    ids_tm = jnp.transpose(inputs.astype(jnp.int32))               # (S, B)
    ids_tm = jnp.pad(ids_tm, ((0, 0), (0, Bp - B)), constant_values=-1)
    ids_col = ids_tm.reshape(S * Bp, 1)

    h0 = (jnp.zeros((B, H), jnp.float32) if state is None
          else state[0].astype(jnp.float32))
    h0_p = jnp.pad(h0, ((0, Bp - B), (0, 0)))

    wih_p = jnp.pad(params["w_ih_t"], ((0, Vp - V), (0, 0)))       # (Vp, H)
    wd_p = jnp.pad(params["w_dense_t"], ((0, 0), (0, Vp - V)))     # (H, Vp)
    bd_p = jnp.pad(params["b_dense"], ((0, 0), (0, Vp - V)))       # (1, Vp)

    kernel = make_fused_rnn_kernel(S, Bp, H, Vp)
    out_p, h_last_p = pl.pallas_call(
        kernel,
        out_shape=(jax.ShapeDtypeStruct((S * Bp, Vp), jnp.float32),
                   jax.ShapeDtypeStruct((Bp, H), jnp.float32)),
        grid=(),
        in_specs=[
            pl.BlockSpec((S * Bp, 1), lambda: (0, 0)),   # token-id column
            pl.BlockSpec((Bp, H), lambda: (0, 0)),       # h0
            pl.BlockSpec((Vp, H), lambda: (0, 0)),       # W_ih^T (padded)
            pl.BlockSpec((H, H), lambda: (0, 0)),        # W_hh^T
            pl.BlockSpec((1, H), lambda: (0, 0)),        # b_ih + b_hh
            pl.BlockSpec((H, Vp), lambda: (0, 0)),       # W_dense^T (padded)
            pl.BlockSpec((1, Vp), lambda: (0, 0)),       # b_dense (padded)
        ],
        out_specs=(
            pl.BlockSpec((S * Bp, Vp), lambda: (0, 0)),  # logits (lane-dense)
            pl.BlockSpec((Bp, H), lambda: (0, 0)),       # final hidden state
        ),
        scratch_shapes=[
            pltpu.VMEM((S * Bp, H), jnp.float32),        # all-timestep input projections
        ],
    )(ids_col, h0_p, wih_p, params["w_hh_t"], params["b_rnn"], wd_p, bd_p)

    # Strip batch / vocab padding outside the kernel (cheap XLA slices).
    out = out_p.reshape(S, Bp, Vp)[:, :B, :V].reshape(S * B, V)
    h_last = h_last_p[:B]
    return out, h_last[None, :, :]


# ------------------------------- Reference -----------------------------------

def reference_forward(inputs, state, params, vocab_size):
    """Pure-JAX reference mirroring the PyTorch module (one_hot + scan RNN + Linear)."""
    x = jax.nn.one_hot(inputs, vocab_size, dtype=jnp.float32)    # [batch, seq, vocab]
    x = jnp.transpose(x, (1, 0, 2))                              # [seq, batch, vocab]
    B = inputs.shape[0]
    H = params["w_hh_t"].shape[0]
    h = jnp.zeros((B, H), jnp.float32) if state is None else state[0]

    def step(h, x_t):
        h_new = jnp.tanh(x_t @ params["w_ih_t"] + h @ params["w_hh_t"]
                         + params["b_rnn"])
        return h_new, h_new

    h_last, y = jax.lax.scan(step, h, x)
    out = y.reshape(-1, H) @ params["w_dense_t"] + params["b_dense"]
    return out, h_last[None]


# --------------------------------- Main ---------------------------------------

if __name__ == "__main__":
    # Small shapes consistent with the module (hidden_num = 256 as in the source).
    vocab_size = 32
    hidden_num = 256
    batch, seq = 4, 8

    key = jax.random.PRNGKey(0)
    k = iter(jax.random.split(key, 8))

    # nn.RNN / nn.Linear default init: U(-1/sqrt(fan), 1/sqrt(fan))
    s_rnn = 1.0 / math.sqrt(hidden_num)
    s_lin = 1.0 / math.sqrt(hidden_num)
    params = {
        # stored transposed so the kernel computes x @ W^T directly
        "w_ih_t": jax.random.uniform(next(k), (vocab_size, hidden_num),
                                     jnp.float32, -s_rnn, s_rnn),
        "w_hh_t": jax.random.uniform(next(k), (hidden_num, hidden_num),
                                     jnp.float32, -s_rnn, s_rnn),
        # combined bias b_ih + b_hh, kept as (1, hidden) for lane-major broadcast
        "b_rnn": (jax.random.uniform(next(k), (1, hidden_num),
                                     jnp.float32, -s_rnn, s_rnn)
                  + jax.random.uniform(next(k), (1, hidden_num),
                                       jnp.float32, -s_rnn, s_rnn)),
        "w_dense_t": jax.random.uniform(next(k), (hidden_num, vocab_size),
                                        jnp.float32, -s_lin, s_lin),
        "b_dense": jax.random.uniform(next(k), (1, vocab_size),
                                      jnp.float32, -s_lin, s_lin),
    }

    inputs = jax.random.randint(next(k), (batch, seq), 0, vocab_size,
                                dtype=jnp.int32)
    state = None   # PyTorch nn.RNN uses zeros when state is None

    out, new_state = rnn_model_forward(inputs, state, params, vocab_size)
    out = jax.block_until_ready(out)
    new_state = jax.block_until_ready(new_state)

    # sanity check against a pure-JAX reference
    ref_out, ref_state = reference_forward(inputs, state, params, vocab_size)
    assert out.shape == (seq * batch, vocab_size)
    assert new_state.shape == (1, batch, hidden_num)
    assert jnp.allclose(out, ref_out, atol=1e-4, rtol=1e-4)
    assert jnp.allclose(new_state, ref_state, atol=1e-4, rtol=1e-4)

    print("KERNEL_OK")
</pallas_src>

<mosaic_0001>
module attributes {stable_mosaic.version = 11 : i64} {
  func.func @kernel(%arg0: memref<64x1xi32, #tpu.memory_space<vmem>>, %arg1: memref<8x256xf32, #tpu.memory_space<vmem>>, %arg2: memref<128x256xf32, #tpu.memory_space<vmem>>, %arg3: memref<256x256xf32, #tpu.memory_space<vmem>>, %arg4: memref<1x256xf32, #tpu.memory_space<vmem>>, %arg5: memref<256x128xf32, #tpu.memory_space<vmem>>, %arg6: memref<1x128xf32, #tpu.memory_space<vmem>>, %arg7: memref<64x128xf32, #tpu.memory_space<vmem>>, %arg8: memref<8x256xf32, #tpu.memory_space<vmem>>, %arg9: memref<64x256xf32, #tpu.memory_space<vmem>>) attributes {dimension_semantics = [], scalar_prefetch = 0 : i64, scratch_operands = 1 : i64, tpu.core_type = #tpu.core_type<tc>} {
    %c0 = arith.constant 0 : index
    %c0_0 = arith.constant 0 : index
    %0 = vector.load %arg0[%c0, %c0_0] : memref<64x1xi32, #tpu.memory_space<vmem>>, vector<64x1xi32>
    %1 = tpu.iota {dimensions = array<i32: 1>} : vector<64x128xi32>
    %2 = vector.broadcast %0 : vector<64x1xi32> to vector<64x128xi32>
    %3 = arith.cmpi eq, %2, %1 : vector<64x128xi32>
    %4 = arith.extui %3 : vector<64x128xi1> to vector<64x128xi32>
    %5 = arith.sitofp %4 : vector<64x128xi32> to vector<64x128xf32>
    %c0_1 = arith.constant 0 : index
    %c0_2 = arith.constant 0 : index
    %6 = vector.load %arg2[%c0_1, %c0_2] : memref<128x256xf32, #tpu.memory_space<vmem>>, vector<128x256xf32>
    %cst = arith.constant dense<0.000000e+00> : vector<64x256xf32>
    %7 = tpu.matmul %5, %6, %cst {dimension_numbers = #tpu.dot_dimension_numbers<[1], [0], [0], [1], [0, 0, 1, 1], [], []>} : vector<64x128xf32>, vector<128x256xf32>, vector<64x256xf32> -> vector<64x256xf32>
    %c0_3 = arith.constant 0 : index
    %c0_4 = arith.constant 0 : index
    %8 = vector.load %arg4[%c0_3, %c0_4] : memref<1x256xf32, #tpu.memory_space<vmem>>, vector<1x256xf32>
    %9 = vector.broadcast %8 : vector<1x256xf32> to vector<64x256xf32>
    %10 = arith.addf %7, %9 : vector<64x256xf32>
    %c0_5 = arith.constant 0 : index
    %c0_6 = arith.constant 0 : index
    %11 = vector.load %arg9[%c0_5, %c0_6] : memref<64x256xf32, #tpu.memory_space<vmem>>, vector<64x256xf32>
    tpu.vector_store %arg9[%c0_5, %c0_6], %10 {strides = array<i32>} : memref<64x256xf32, #tpu.memory_space<vmem>>, vector<64x256xf32>,
    %c0_7 = arith.constant 0 : index
    %c0_8 = arith.constant 0 : index
    %12 = vector.load %arg1[%c0_7, %c0_8] : memref<8x256xf32, #tpu.memory_space<vmem>>, vector<8x256xf32>
    %c0_9 = arith.constant 0 : index
    %c0_10 = arith.constant 0 : index
    %13 = vector.load %arg9[%c0_9, %c0_10] : memref<64x256xf32, #tpu.memory_space<vmem>>, vector<8x256xf32>
    %c0_11 = arith.constant 0 : index
    %c0_12 = arith.constant 0 : index
    %14 = vector.load %arg3[%c0_11, %c0_12] : memref<256x256xf32, #tpu.memory_space<vmem>>, vector<256x256xf32>
    %cst_13 = arith.constant dense<0.000000e+00> : vector<8x256xf32>
    %15 = tpu.matmul %12, %14, %cst_13 {dimension_numbers = #tpu.dot_dimension_numbers<[1], [0], [0], [1], [0, 0, 1, 1], [], []>} : vector<8x256xf32>, vector<256x256xf32>, vector<8x256xf32> -> vector<8x256xf32>
    %16 = arith.addf %13, %15 : vector<8x256xf32>
    %17 = math.tanh %16 : vector<8x256xf32>
    %c8 = arith.constant 8 : index
    %c0_14 = arith.constant 0 : index
    %18 = vector.load %arg9[%c8, %c0_14] : memref<64x256xf32, #tpu.memory_space<vmem>>, vector<8x256xf32>
    %c0_15 = arith.constant 0 : index
    %c0_16 = arith.constant 0 : index
    %19 = vector.load %arg3[%c0_15, %c0_16] : memref<256x256xf32, #tpu.memory_space<vmem>>, vector<256x256xf32>
    %cst_17 = arith.constant dense<0.000000e+00> : vector<8x256xf32>
    %20 = tpu.matmul %17, %19, %cst_17 {dimension_numbers = #tpu.dot_dimension_numbers<[1], [0], [0], [1], [0, 0, 1, 1], [], []>} : vector<8x256xf32>, vector<256x256xf32>, vector<8x256xf32> -> vector<8x256xf32>
    %21 = arith.addf %18, %20 : vector<8x256xf32>
    %22 = math.tanh %21 : vector<8x256xf32>
    %c16 = arith.constant 16 : index
    %c0_18 = arith.constant 0 : index
    %23 = vector.load %arg9[%c16, %c0_18] : memref<64x256xf32, #tpu.memory_space<vmem>>, vector<8x256xf32>
    %c0_19 = arith.constant 0 : index
    %c0_20 = arith.constant 0 : index
    %24 = vector.load %arg3[%c0_19, %c0_20] : memref<256x256xf32, #tpu.memory_space<vmem>>, vector<256x256xf32>
    %cst_21 = arith.constant dense<0.000000e+00> : vector<8x256xf32>
    %25 = tpu.matmul %22, %24, %cst_21 {dimension_numbers = #tpu.dot_dimension_numbers<[1], [0], [0], [1], [0, 0, 1, 1], [], []>} : vector<8x256xf32>, vector<256x256xf32>, vector<8x256xf32> -> vector<8x256xf32>
    %26 = arith.addf %23, %25 : vector<8x256xf32>
    %27 = math.tanh %26 : vector<8x256xf32>
    %c24 = arith.constant 24 : index
    %c0_22 = arith.constant 0 : index
    %28 = vector.load %arg9[%c24, %c0_22] : memref<64x256xf32, #tpu.memory_space<vmem>>, vector<8x256xf32>
    %c0_23 = arith.constant 0 : index
    %c0_24 = arith.constant 0 : index
    %29 = vector.load %arg3[%c0_23, %c0_24] : memref<256x256xf32, #tpu.memory_space<vmem>>, vector<256x256xf32>
    %cst_25 = arith.constant dense<0.000000e+00> : vector<8x256xf32>
    %30 = tpu.matmul %27, %29, %cst_25 {dimension_numbers = #tpu.dot_dimension_numbers<[1], [0], [0], [1], [0, 0, 1, 1], [], []>} : vector<8x256xf32>, vector<256x256xf32>, vector<8x256xf32> -> vector<8x256xf32>
    %31 = arith.addf %28, %30 : vector<8x256xf32>
    %32 = math.tanh %31 : vector<8x256xf32>
    %c32 = arith.constant 32 : index
    %c0_26 = arith.constant 0 : index
    %33 = vector.load %arg9[%c32, %c0_26] : memref<64x256xf32, #tpu.memory_space<vmem>>, vector<8x256xf32>
    %c0_27 = arith.constant 0 : index
    %c0_28 = arith.constant 0 : index
    %34 = vector.load %arg3[%c0_27, %c0_28] : memref<256x256xf32, #tpu.memory_space<vmem>>, vector<256x256xf32>
    %cst_29 = arith.constant dense<0.000000e+00> : vector<8x256xf32>
    %35 = tpu.matmul %32, %34, %cst_29 {dimension_numbers = #tpu.dot_dimension_numbers<[1], [0], [0], [1], [0, 0, 1, 1], [], []>} : vector<8x256xf32>, vector<256x256xf32>, vector<8x256xf32> -> vector<8x256xf32>
    %36 = arith.addf %33, %35 : vector<8x256xf32>
    %37 = math.tanh %36 : vector<8x256xf32>
    %c40 = arith.constant 40 : index
    %c0_30 = arith.constant 0 : index
    %38 = vector.load %arg9[%c40, %c0_30] : memref<64x256xf32, #tpu.memory_space<vmem>>, vector<8x256xf32>
    %c0_31 = arith.constant 0 : index
    %c0_32 = arith.constant 0 : index
    %39 = vector.load %arg3[%c0_31, %c0_32] : memref<256x256xf32, #tpu.memory_space<vmem>>, vector<256x256xf32>
    %cst_33 = arith.constant dense<0.000000e+00> : vector<8x256xf32>
    %40 = tpu.matmul %37, %39, %cst_33 {dimension_numbers = #tpu.dot_dimension_numbers<[1], [0], [0], [1], [0, 0, 1, 1], [], []>} : vector<8x256xf32>, vector<256x256xf32>, vector<8x256xf32> -> vector<8x256xf32>
    %41 = arith.addf %38, %40 : vector<8x256xf32>
    %42 = math.tanh %41 : vector<8x256xf32>
    %c48 = arith.constant 48 : index
    %c0_34 = arith.constant 0 : index
    %43 = vector.load %arg9[%c48, %c0_34] : memref<64x256xf32, #tpu.memory_space<vmem>>, vector<8x256xf32>
    %c0_35 = arith.constant 0 : index
    %c0_36 = arith.constant 0 : index
    %44 = vector.load %arg3[%c0_35, %c0_36] : memref<256x256xf32, #tpu.memory_space<vmem>>, vector<256x256xf32>
    %cst_37 = arith.constant dense<0.000000e+00> : vector<8x256xf32>
    %45 = tpu.matmul %42, %44, %cst_37 {dimension_numbers = #tpu.dot_dimension_numbers<[1], [0], [0], [1], [0, 0, 1, 1], [], []>} : vector<8x256xf32>, vector<256x256xf32>, vector<8x256xf32> -> vector<8x256xf32>
    %46 = arith.addf %43, %45 : vector<8x256xf32>
    %47 = math.tanh %46 : vector<8x256xf32>
    %c56 = arith.constant 56 : index
    %c0_38 = arith.constant 0 : index
    %48 = vector.load %arg9[%c56, %c0_38] : memref<64x256xf32, #tpu.memory_space<vmem>>, vector<8x256xf32>
    %c0_39 = arith.constant 0 : index
    %c0_40 = arith.constant 0 : index
    %49 = vector.load %arg3[%c0_39, %c0_40] : memref<256x256xf32, #tpu.memory_space<vmem>>, vector<256x256xf32>
    %cst_41 = arith.constant dense<0.000000e+00> : vector<8x256xf32>
    %50 = tpu.matmul %47, %49, %cst_41 {dimension_numbers = #tpu.dot_dimension_numbers<[1], [0], [0], [1], [0, 0, 1, 1], [], []>} : vector<8x256xf32>, vector<256x256xf32>, vector<8x256xf32> -> vector<8x256xf32>
    %51 = arith.addf %48, %50 : vector<8x256xf32>
    %52 = math.tanh %51 : vector<8x256xf32>
    %c0_42 = arith.constant 0 : index
    %c0_43 = arith.constant 0 : index
    %53 = vector.load %arg8[%c0_42, %c0_43] : memref<8x256xf32, #tpu.memory_space<vmem>>, vector<8x256xf32>
    tpu.vector_store %arg8[%c0_42, %c0_43], %52 {strides = array<i32>} : memref<8x256xf32, #tpu.memory_space<vmem>>, vector<8x256xf32>,
    %54 = tpu.concatenate %17, %22, %27, %32, %37, %42, %47, %52 in 0 : vector<8x256xf32>, vector<8x256xf32>, vector<8x256xf32>, vector<8x256xf32>, vector<8x256xf32>, vector<8x256xf32>, vector<8x256xf32>, vector<8x256xf32> -> vector<64x256xf32>
    %c0_44 = arith.constant 0 : index
    %c0_45 = arith.constant 0 : index
    %55 = vector.load %arg5[%c0_44, %c0_45] : memref<256x128xf32, #tpu.memory_space<vmem>>, vector<256x128xf32>
    %cst_46 = arith.constant dense<0.000000e+00> : vector<64x128xf32>
    %56 = tpu.matmul %54, %55, %cst_46 {dimension_numbers = #tpu.dot_dimension_numbers<[1], [0], [0], [1], [0, 0, 1, 1], [], []>} : vector<64x256xf32>, vector<256x128xf32>, vector<64x128xf32> -> vector<64x128xf32>
    %c0_47 = arith.constant 0 : index
    %c0_48 = arith.constant 0 : index
    %57 = vector.load %arg6[%c0_47, %c0_48] : memref<1x128xf32, #tpu.memory_space<vmem>>, vector<1x128xf32>
    %58 = vector.broadcast %57 : vector<1x128xf32> to vector<64x128xf32>
    %59 = arith.addf %56, %58 : vector<64x128xf32>
    %c0_49 = arith.constant 0 : index
    %c0_50 = arith.constant 0 : index
    %60 = vector.load %arg7[%c0_49, %c0_50] : memref<64x128xf32, #tpu.memory_space<vmem>>, vector<64x128xf32>
    tpu.vector_store %arg7[%c0_49, %c0_50], %59 {strides = array<i32>} : memref<64x128xf32, #tpu.memory_space<vmem>>, vector<64x128xf32>,
    return
  }
}

</mosaic_0001>

<bundles_post_ra>
// kernel: tpu_custom_call.1
= control target key start
LH: loop header
LB: loop body
LE: loop exit
PB: predicated region body
PF: predicated region fallthrough
CT: control target
= control target key end

     0   :  { %14 = vsyncpa [#allocation4], 0  ;;  %s2455_s0 = inlined_call_operand.vmem [shape: s32[64,1], index: 0, kind: input, shape index: {}]   ;;  %s2456_s1 = inlined_call_operand.vmem [shape: f32[8,256], index: 1, kind: input, shape index: {}]   ;;  %s2457_s2 = inlined_call_operand.hbm [shape: f32[128,256], index: 2, kind: input, shape index: {}]   ;;  %s2458_s3 = inlined_call_operand.hbm [shape: f32[256,256], index: 3, kind: input, shape index: {}]   ;;  %s2459_s4 = inlined_call_operand.vmem [shape: f32[1,256], index: 4, kind: input, shape index: {}]   ;;  %s2460_s5 = inlined_call_operand.hbm [shape: f32[256,128], index: 5, kind: input, shape index: {}]   ;;  %s2461_s6 = inlined_call_operand.vmem [shape: f32[1,128], index: 6, kind: input, shape index: {}]   ;;  %s2462_s7 = inlined_call_operand.hbm [shape: f32[64,128], index: 7, kind: output, shape index: {0}]   ;;  %s2463_s8 = inlined_call_operand.hbm [shape: f32[8,256], index: 8, kind: output, shape index: {1}]  }
   0x1   :  { %15 = vsyncpa [#allocation7], 0 }
   0x2   :  { %16 = vsyncpa [#allocation5], 0 }
   0x3   :  { %17 = vsyncpa [#allocation11], 0  ;;  %s1461_s27 = smov [#allocation6]   ;;  %s1462_s29 = smov [#allocation3]  }
   0x4   :  { %s39_s28 = sshll.u32 %s1461_s27, 4  ;;  %s27_s30 = sshll.u32 %s1462_s29, 4  ;;  %s40_s28 = int_to_ptr.vmem [resolvable:$true] %s39_s28  ;;  %s28_s30 = int_to_ptr.vmem [resolvable:$true] %s27_s30 }
   0x5   :  { %s1361_s9 = scalar_lea.vmem %s40_s28, 8192  ;;  %p1366_p1 = scmp.lt.s32.totalorder %s40_s28, %s40_s28 }
   0x6   :  { %p1362_p0 = scmp.ne.s32.totalorder %s40_s28, %s1361_s9  ;;  %p1367_p2 = scmp.lt.s32.totalorder %s1361_s9, %s1361_s9 }
   0x8   :  { %p1368_p3 = por %p1367_p2, %p1366_p1 }
   0xa   :  { %p1369_p4 = pnand %p1368_p3, %p1362_p0 }
   0xc   :  { %1372 = shalt.err (!%p1369_p4)
}
   0xd   :  { %s1463_s10 = smov 256   ;;  %s1464_s11 = smov 16  }
   0xe   :  { %45 = dma.hbm_to_vmem [thread:$0]  %s2458_s3, 8192, %s40_s28, [#allocation7], %s1463_s10, %s1463_s10, %s1464_s11  }
   0xf   :  { %s1381_s14 = scalar_lea.vmem %s28_s30, 4096  ;;  %p1386_p6 = scmp.lt.s32.totalorder %s28_s30, %s28_s30 }
  0x10   :  { %p1382_p5 = scmp.ne.s32.totalorder %s28_s30, %s1381_s14  ;;  %p1387_p7 = scmp.lt.s32.totalorder %s1381_s14, %s1381_s14 }
  0x12   :  { %p1388_p8 = por %p1387_p7, %p1386_p6 }
  0x14   :  { %p1389_p9 = pnand %p1388_p8, %p1382_p5 }
  0x16   :  { %1392 = shalt.err (!%p1389_p9)
}
  0x17   :  { %33 = dma.hbm_to_vmem [thread:$0]  %s2457_s2, 4096, %s28_s30, [#allocation4], %s1463_s10, %s1463_s10, %s1464_s11  }
  0x18   :  { %s1465_s17 = smov [#allocation8]  }
  0x19   :  { %s53_s18 = sshll.u32 %s1465_s17, 4  ;;  %s54_s18 = int_to_ptr.vmem [resolvable:$true] %s53_s18 }
  0x1a   :  { %s1401_s19 = scalar_lea.vmem %s54_s18, 4096  ;;  %p1406_p11 = scmp.lt.s32.totalorder %s54_s18, %s54_s18 }
  0x1b   :  { %p1402_p10 = scmp.ne.s32.totalorder %s54_s18, %s1401_s19  ;;  %p1407_p12 = scmp.lt.s32.totalorder %s1401_s19, %s1401_s19 }
  0x1d   :  { %p1408_p13 = por %p1407_p12, %p1406_p11 }
  0x1f   :  { %p1409_p0 = pnand %p1408_p13, %p1402_p10 }
  0x21   :  { %1412 = shalt.err (!%p1409_p0)
}
  0x22   :  { %s1466_s3 = smov 128   ;;  %s1467_s20 = smov 8  }
  0x23   :  { %59 = dma.hbm_to_vmem [thread:$0]  %s2460_s5, 4096, %s54_s18, [#allocation7], %s1466_s3, %s1466_s3, %s1467_s20  }
  0x24   :  { %1453 = dma.done.wait [#allocation4], 4096  }
  0x25   :  { %1454 = vsyncadd [#allocation4], 4294963200 }
  0x26   :  { %1455 = dma.done.wait [#allocation7], 12288  }
  0x27   :  { %1456 = vsyncadd [#allocation7], 4294955008  ;;  %v1468_v0 = vmov 0   ;;  %v2464_v1 = vmov 0.0   ;;  %v71_v2 = vld [vmem:[%s2455_s0] sm:$0xff]  ;;  %v73_v3 = vld [vmem:[%s2455_s0 + $0x10] sm:$0xff] }
  0x28   :  { %1255 = vset.pattern.permute.xlu0 %v1468_v0  ;;  %1256 = vset.pattern.permute.xlu1 %v1468_v0  ;;  %v72_v4 = vld [vmem:[%s2455_s0 + $0x8] sm:$0xff]  ;;  %v74_v5 = vld [vmem:[%s2455_s0 + $0x18] sm:$0xff]  ;;  %v1545_v7 = vld [vmem:[#allocation6 + $0xf0] sm:$0xff] }
  0x29   :  { %237 = vmatprep.mubr.f32.mxu0 %v2464_v1  ;;  %82 = vperm.xlu0 %1255, %v71_v2   ;;  %v1543_v6 = vld [vmem:[#allocation6 + $0xf8] sm:$0xff]  ;;  %v1548_v8 = vld [vmem:[#allocation6 + $0xe8] sm:$0xff]  ;;  %v1551_v9 = vld [vmem:[#allocation6 + $0xe0] sm:$0xff] }
  0x2a   :  { %88 = vperm.xlu1 %1256, %v73_v3   ;;  %2518 = vst [vmem:[#allocation16_spill] sm:$0xff] %v1543_v6  ;;  %370 = vmatprep.subr.mxu1 %v1543_v6  ;;  %v1553_v10 = vld [vmem:[#allocation6 + $0xd8] sm:$0xff]  ;;  %v75_v11 = vld [vmem:[%s2455_s0 + $0x20] sm:$0xff]  ;;  %v76_v12 = vld [vmem:[%s2455_s0 + $0x28] sm:$0xff] }
  0x2b   :  { %371 = vmatpush1.msra.mxu1 %v1545_v7  ;;  %v1563_v13 = vld [vmem:[#allocation6 + $0xd0] sm:$0xff]  ;;  %v1566_v14 = vld [vmem:[#allocation6 + $0xc8] sm:$0xff]  ;;  %v1568_v15 = vld [vmem:[#allocation6 + $0xc0] sm:$0xff] }
  0x2c   :  { %372 = vmatprep.subr.mxu1 %v1548_v8  ;;  %v77_v16 = vld [vmem:[%s2455_s0 + $0x30] sm:$0xff]  ;;  %v1574_v17 = vld [vmem:[#allocation6 + $0xb8] sm:$0xff]  ;;  %v1580_v19 = vld [vmem:[#allocation6 + $0xa8] sm:$0xff] }
  0x2d   :  { %85 = vperm.xlu0 %1255, %v72_v4   ;;  %373 = vmatpush1.msra.mxu1 %v1551_v9  ;;  %v1577_v18 = vld [vmem:[#allocation6 + $0xb0] sm:$0xff]  ;;  %v1583_v20 = vld [vmem:[#allocation6 + $0xa0] sm:$0xff]  ;;  %v160_v21 = vld [vmem:[#allocation3 + $0xf8] sm:$0xff] }
  0x2e   :  { %91 = vperm.xlu1 %1256, %v74_v5   ;;  %374 = vmatprep.subr.mxu1 %v1553_v10  ;;  %v159_v22 = vld [vmem:[#allocation3 + $0xf0] sm:$0xff]  ;;  %v1586_v23 = vld [vmem:[#allocation6 + $0x98] sm:$0xff]  ;;  %v158_v24 = vld [vmem:[#allocation3 + $0xe8] sm:$0xff] }
  0x2f   :  { %375 = vmatpush1.msra.mxu1 %v1563_v13  ;;  %173 = vmatprep.subr.mxu0 %v160_v21  ;;  %v1589_v25 = vld [vmem:[#allocation6 + $0x90] sm:$0xff]  ;;  %v157_v26 = vld [vmem:[#allocation3 + $0xe0] sm:$0xff]  ;;  %v156_v27 = vld [vmem:[#allocation3 + $0xd8] sm:$0xff] }
  0x30   :  { %376 = vmatprep.subr.mxu1 %v1566_v14  ;;  %174 = vmatpush1.msra.mxu0 %v159_v22  ;;  %v1592_v28 = vld [vmem:[#allocation6 + $0x88] sm:$0xff]  ;;  %v155_v29 = vld [vmem:[#allocation3 + $0xd0] sm:$0xff]  ;;  %v1595_v30 = vld [vmem:[#allocation6 + $0x80] sm:$0xff] }
  0x31   :  { %94 = vperm.xlu0 %1255, %v75_v11   ;;  %377 = vmatpush1.msra.mxu1 %v1568_v15  ;;  %v154_v31 = vld [vmem:[#allocation3 + $0xc8] sm:$0xff]  ;;  %v1598_v32 = vld [vmem:[#allocation6 + $0x78] sm:$0xff]  ;;  %v153_v33 = vld [vmem:[#allocation3 + $0xc0] sm:$0xff] }
  0x32   :  { %97 = vperm.xlu1 %1256, %v76_v12   ;;  %378 = vmatprep.subr.mxu1 %v1574_v17  ;;  %v1601_v34 = vld [vmem:[#allocation6 + $0x70] sm:$0xff]  ;;  %v152_v35 = vld [vmem:[#allocation3 + $0xb8] sm:$0xff]  ;;  %v1604_v36 = vld [vmem:[#allocation6 + $0x68] sm:$0xff] }
  0x33   :  { %379 = vmatpush1.msra.mxu1 %v1577_v18  ;;  %175 = vmatprep.subr.mxu0 %v158_v24  ;;  %v151_v37 = vld [vmem:[#allocation3 + $0xb0] sm:$0xff]  ;;  %v1607_v38 = vld [vmem:[#allocation6 + $0x60] sm:$0xff]  ;;  %v150_v39 = vld [vmem:[#allocation3 + $0xa8] sm:$0xff] }
  0x34   :  { %380 = vmatprep.subr.mxu1 %v1580_v19  ;;  %176 = vmatpush1.msra.mxu0 %v157_v26  ;;  %v1610_v40 = vld [vmem:[#allocation6 + $0x58] sm:$0xff]  ;;  %v149_v41 = vld [vmem:[#allocation3 + $0xa0] sm:$0xff]  ;;  %v1613_v42 = vld [vmem:[#allocation6 + $0x50] sm:$0xff] }
  0x35   :  { %100 = vperm.xlu0 %1255, %v77_v16   ;;  %381 = vmatpush1.msra.mxu1 %v1583_v20  ;;  %v148_v43 = vld [vmem:[#allocation3 + $0x98] sm:$0xff]  ;;  %v1616_v44 = vld [vmem:[#allocation6 + $0x48] sm:$0xff]  ;;  %v147_v45 = vld [vmem:[#allocation3 + $0x90] sm:$0xff] }
  0x36   :  { %382 = vmatprep.subr.mxu1 %v1586_v23  ;;  %177 = vmatprep.subr.mxu0 %v156_v27  ;;  %v1619_v46 = vld [vmem:[#allocation6 + $0x40] sm:$0xff]  ;;  %v146_v47 = vld [vmem:[#allocation3 + $0x88] sm:$0xff]  ;;  %v1622_v48 = vld [vmem:[#allocation6 + $0x38] sm:$0xff] }
  0x37   :  { %383 = vmatpush1.msra.mxu1 %v1589_v25  ;;  %178 = vmatpush1.msra.mxu0 %v155_v29  ;;  %v145_v49 = vld [vmem:[#allocation3 + $0x80] sm:$0xff]  ;;  %v1625_v50 = vld [vmem:[#allocation6 + $0x30] sm:$0xff]  ;;  %v144_v51 = vld [vmem:[#allocation3 + $0x78] sm:$0xff] }
  0x38   :  { %384 = vmatprep.subr.mxu1 %v1592_v28  ;;  %179 = vmatprep.subr.mxu0 %v154_v31  ;;  %v1628_v52 = vld [vmem:[#allocation6 + $0x28] sm:$0xff]  ;;  %v143_v53 = vld [vmem:[#allocation3 + $0x70] sm:$0xff]  ;;  %v1631_v54 = vld [vmem:[#allocation6 + $0x20] sm:$0xff] }
  0x39   :  { %385 = vmatpush1.msra.mxu1 %v1595_v30  ;;  %180 = vmatpush1.msra.mxu0 %v153_v33  ;;  %v142_v55 = vld [vmem:[#allocation3 + $0x68] sm:$0xff]  ;;  %v1634_v56 = vld [vmem:[#allocation6 + $0x18] sm:$0xff]  ;;  %v141_v57 = vld [vmem:[#allocation3 + $0x60] sm:$0xff] }
  0x3a   :  { %386 = vmatprep.subr.mxu1 %v1598_v32  ;;  %181 = vmatprep.subr.mxu0 %v152_v35  ;;  %v1637_v58 = vld [vmem:[#allocation6 + $0x10] sm:$0xff]  ;;  %v140_v59 = vld [vmem:[#allocation3 + $0x58] sm:$0xff]  ;;  %v1640_v60 = vld [vmem:[#allocation6 + $0x8] sm:$0xff] }
  0x3b   :  { %387 = vmatpush1.msra.mxu1 %v1601_v34  ;;  %182 = vmatpush1.msra.mxu0 %v151_v37  ;;  %v139_v61 = vld [vmem:[#allocation3 + $0x50] sm:$0xff]  ;;  %v1643_v62 = vld [vmem:[#allocation6] sm:$0xff]  ;;  %v138_v63 = vld [vmem:[#allocation3 + $0x48] sm:$0xff] }
  0x3c   :  { %388 = vmatprep.subr.mxu1 %v1604_v36  ;;  %183 = vmatprep.subr.mxu0 %v150_v39  ;;  %v1646_v0 = vld [vmem:[#allocation6 + $0x1f8] sm:$0xff]  ;;  %v137_v2 = vld [vmem:[#allocation3 + $0x40] sm:$0xff]  ;;  %v1649_v3 = vld [vmem:[#allocation6 + $0x1f0] sm:$0xff] }
  0x3d   :  { %389 = vmatpush1.msra.mxu1 %v1607_v38  ;;  %184 = vmatpush1.msra.mxu0 %v149_v41  ;;  %v136_v4 = vld [vmem:[#allocation3 + $0x38] sm:$0xff]  ;;  %v1652_v5 = vld [vmem:[#allocation6 + $0x1e8] sm:$0xff]  ;;  %v135_v11 = vld [vmem:[#allocation3 + $0x30] sm:$0xff] }
  0x3e   :  { %390 = vmatprep.subr.mxu1 %v1610_v40  ;;  %185 = vmatprep.subr.mxu0 %v148_v43  ;;  %v1655_v12 = vld [vmem:[#allocation6 + $0x1e0] sm:$0xff]  ;;  %v134_v16 = vld [vmem:[#allocation3 + $0x28] sm:$0xff]  ;;  %v1658_v21 = vld [vmem:[#allocation6 + $0x1d8] sm:$0xff] }
  0x3f   :  { %391 = vmatpush1.msra.mxu1 %v1613_v42  ;;  %186 = vmatpush1.msra.mxu0 %v147_v45  ;;  %v133_v22 = vld [vmem:[#allocation3 + $0x20] sm:$0xff]  ;;  %v1661_v24 = vld [vmem:[#allocation6 + $0x1d0] sm:$0xff]  ;;  %v132_v26 = vld [vmem:[#allocation3 + $0x18] sm:$0xff] }
  0x40   :  { %392 = vmatprep.subr.mxu1 %v1616_v44  ;;  %187 = vmatprep.subr.mxu0 %v146_v47  ;;  %v1664_v27 = vld [vmem:[#allocation6 + $0x1c8] sm:$0xff]  ;;  %v131_v29 = vld [vmem:[#allocation3 + $0x10] sm:$0xff]  ;;  %v1667_v31 = vld [vmem:[#allocation6 + $0x1c0] sm:$0xff] }
  0x41   :  { %393 = vmatpush1.msra.mxu1 %v1619_v46  ;;  %188 = vmatpush1.msra.mxu0 %v145_v49  ;;  %v130_v33 = vld [vmem:[#allocation3 + $0x8] sm:$0xff]  ;;  %v1670_v35 = vld [vmem:[#allocation6 + $0x1b8] sm:$0xff]  ;;  %v129_v37 = vld [vmem:[#allocation3] sm:$0xff] }
  0x42   :  { %394 = vmatprep.subr.mxu1 %v1622_v48  ;;  %189 = vmatprep.subr.mxu0 %v144_v51  ;;  %v1673_v39 = vld [vmem:[#allocation6 + $0x1b0] sm:$0xff]  ;;  %v303_v41 = vld [vmem:[%s2456_s1 + $0x8] sm:$0xff]  ;;  %v78_v45 = vld [vmem:[%s2455_s0 + $0x38] sm:$0xff] }
  0x43   :  { %395 = vmatpush1.msra.mxu1 %v1625_v50  ;;  %190 = vmatpush1.msra.mxu0 %v143_v53  ;;  %v1679_v43 = vld [vmem:[#allocation6 + $0x1a8] sm:$0xff]  ;;  %v1685_v47 = vld [vmem:[#allocation6 + $0x1a0] sm:$0xff]  ;;  %v1688_v49 = vld [vmem:[#allocation6 + $0x198] sm:$0xff] }
  0x44   :  { %396 = vmatprep.subr.mxu1 %v1628_v52  ;;  %191 = vmatprep.subr.mxu0 %v142_v55  ;;  %2519 = vst [vmem:[#allocation17_spill] sm:$0xff] %v1679_v43  ;;  %2520 = vst [vmem:[#allocation18_spill] sm:$0xff] %v1685_v47  ;;  %v1691_v51 = vld [vmem:[#allocation6 + $0x190] sm:$0xff]  ;;  %v1694_v53 = vld [vmem:[#allocation6 + $0x188] sm:$0xff] }
  0x45   :  { %397 = vmatpush1.msra.mxu1 %v1631_v54  ;;  %192 = vmatpush1.msra.mxu0 %v141_v57  ;;  %2521 = vst [vmem:[#allocation19_spill] sm:$0xff] %v1688_v49  ;;  %2522 = vst [vmem:[#allocation20_spill] sm:$0xff] %v1694_v53  ;;  %v1698_v55 = vld [vmem:[#allocation6 + $0x180] sm:$0xff]  ;;  %v1701_v57 = vld [vmem:[#allocation6 + $0x178] sm:$0xff] }
  0x46   :  { %398 = vmatprep.subr.mxu1 %v1634_v56  ;;  %193 = vmatprep.subr.mxu0 %v140_v59  ;;  %v1704_v59 = vld [vmem:[#allocation6 + $0x170] sm:$0xff]  ;;  %v1746_v1 = vld [vmem:[#allocation6 + $0x100] sm:$0xff] }
  0x47   :  { %399 = vmatpush1.msra.mxu1 %v1637_v58  ;;  %194 = vmatpush1.msra.mxu0 %v139_v61  ;;  %2523 = vst [vmem:[#allocation21_spill] sm:$0xff] %v1704_v59  ;;  %v1707_v61 = vld [vmem:[#allocation6 + $0x168] sm:$0xff]  ;;  %2537 = vst [vmem:[#allocation35_spill] sm:$0xff] %v1746_v1 }
  0x48   :  { %400 = vmatprep.subr.mxu1 %v1640_v60  ;;  %195 = vmatprep.subr.mxu0 %v138_v63  ;;  %2524 = vst [vmem:[#allocation22_spill] sm:$0xff] %v1707_v61  ;;  %v1710_v63 = vld [vmem:[#allocation6 + $0x160] sm:$0xff] }
  0x49   :  { %401 = vmatpush1.msra.mxu1 %v1643_v62  ;;  %196 = vmatpush1.msra.mxu0 %v137_v2  ;;  %2525 = vst [vmem:[#allocation23_spill] sm:$0xff] %v1710_v63  ;;  %v1713_v2 = vld [vmem:[#allocation6 + $0x158] sm:$0xff] }
  0x4a   :  { %402 = vmatprep.subr.mxu1 %v1646_v0  ;;  %197 = vmatprep.subr.mxu0 %v136_v4  ;;  %2526 = vst [vmem:[#allocation24_spill] sm:$0xff] %v1713_v2  ;;  %v1716_v4 = vld [vmem:[#allocation6 + $0x150] sm:$0xff] }
  0x4b   :  { %403 = vmatpush2.msra.mxu1 %v1649_v3  ;;  %198 = vmatpush1.msra.mxu0 %v135_v11  ;;  %2527 = vst [vmem:[#allocation25_spill] sm:$0xff] %v1716_v4  ;;  %v1719_v11 = vld [vmem:[#allocation6 + $0x148] sm:$0xff] }
  0x4c   :  { %404 = vmatprep.subr.mxu1 %v1652_v5  ;;  %199 = vmatprep.subr.mxu0 %v134_v16  ;;  %2528 = vst [vmem:[#allocation26_spill] sm:$0xff] %v1719_v11  ;;  %v1722_v16 = vld [vmem:[#allocation6 + $0x140] sm:$0xff] }
  0x4d   :  { %405 = vmatpush2.msra.mxu1 %v1655_v12  ;;  %200 = vmatpush1.msra.mxu0 %v133_v22  ;;  %2529 = vst [vmem:[#allocation27_spill] sm:$0xff] %v1722_v16  ;;  %v1725_v22 = vld [vmem:[#allocation6 + $0x138] sm:$0xff] }
  0x4e   :  { %406 = vmatprep.subr.mxu1 %v1658_v21  ;;  %201 = vmatprep.subr.mxu0 %v132_v26  ;;  %2530 = vst [vmem:[#allocation28_spill] sm:$0xff] %v1725_v22  ;;  %v1728_v26 = vld [vmem:[#allocation6 + $0x130] sm:$0xff] }
  0x4f   :  { %407 = vmatpush2.msra.mxu1 %v1661_v24  ;;  %202 = vmatpush1.msra.mxu0 %v131_v29  ;;  %2531 = vst [vmem:[#allocation29_spill] sm:$0xff] %v1728_v26  ;;  %v1731_v29 = vld [vmem:[#allocation6 + $0x128] sm:$0xff] }
  0x50   :  { %408 = vmatprep.subr.mxu1 %v1664_v27  ;;  %203 = vmatprep.subr.mxu0 %v130_v33  ;;  %2532 = vst [vmem:[#allocation30_spill] sm:$0xff] %v1731_v29  ;;  %v1734_v33 = vld [vmem:[#allocation6 + $0x120] sm:$0xff] }
  0x51   :  { %409 = vmatpush2.msra.mxu1 %v1667_v31  ;;  %204 = vmatpush1.msra.mxu0 %v129_v37  ;;  %2533 = vst [vmem:[#allocation31_spill] sm:$0xff] %v1734_v33  ;;  %v1737_v37 = vld [vmem:[#allocation6 + $0x118] sm:$0xff] }
  0x52   :  { %410 = vmatprep.subr.mxu1 %v1670_v35  ;;  %434 = vmatprep.mubr.f32.mxu1 %v303_v41  ;;  %2534 = vst [vmem:[#allocation32_spill] sm:$0xff] %v1737_v37  ;;  %v1740_v41 = vld [vmem:[#allocation6 + $0x110] sm:$0xff] }
  0x53   :  { %411 = vmatpush2.msra.mxu1 %v1673_v39  ;;  %103 = vperm.xlu1 %1256, %v78_v45   ;;  %2535 = vst [vmem:[#allocation33_spill] sm:$0xff] %v1740_v41  ;;  %v1743_v45 = vld [vmem:[#allocation6 + $0x108] sm:$0xff] }
  0x54   :  { %412 = vmatprep.subr.mxu1 %v1679_v43  ;;  %447 = vmatprep.subr.mxu0 %v1543_v6  ;;  %2536 = vst [vmem:[#allocation34_spill] sm:$0xff] %v1743_v45 }
  0x55   :  { %413 = vmatpush2.msra.mxu1 %v1685_v47 }
  0x56   :  { %414 = vmatprep.subr.mxu1 %v1688_v49 }
  0x57   :  { %415 = vmatpush2.msra.mxu1 %v1691_v51 }
  0x58   :  { %416 = vmatprep.subr.mxu1 %v1694_v53 }
  0x59   :  { %417 = vmatpush2.msra.mxu1 %v1698_v55 }
  0x5a   :  { %418 = vmatprep.subr.mxu1 %v1701_v57 }
  0x5b   :  { %419 = vmatpush2.msra.mxu1 %v1704_v59 }
  0x5c   :  { %420 = vmatprep.subr.mxu1 %v1707_v61 }
  0x5d   :  { %421 = vmatpush2.msra.mxu1 %v1710_v63 }
  0x5e   :  { %422 = vmatprep.subr.mxu1 %v1713_v2 }
  0x5f   :  { %423 = vmatpush2.msra.mxu1 %v1716_v4 }
  0x60   :  { %424 = vmatprep.subr.mxu1 %v1719_v11 }
  0x61   :  { %425 = vmatpush2.msra.mxu1 %v1722_v16 }
  0x62   :  { %426 = vmatprep.subr.mxu1 %v1725_v22 }
  0x63   :  { %427 = vmatpush2.msra.mxu1 %v1728_v26  ;;  %v302_v26 = vld [vmem:[%s2456_s1] sm:$0xff] }
  0x64   :  { %428 = vmatprep.subr.mxu1 %v1731_v29 }
  0x65   :  { %429 = vmatpush2.msra.mxu1 %v1734_v33 }
  0x66   :  { %430 = vmatprep.subr.mxu1 %v1737_v37 }
  0x67   :  { %431 = vmatpush2.msra.mxu1 %v1740_v41 }
  0x68   :  { %432 = vmatprep.subr.mxu1 %v1743_v45 }
  0x69   :  { %433 = vmatpush2.msra.mxu1 %v1746_v1 }
  0x6a   :  { %435 = vmatmul.mubr.f32.vlgmr.msra.gmra.mxu1 %v302_v26  ;;  %524 = vmatprep.subr.mxu1 %v1543_v6  ;;  %v2478_v26 = vlaneseq }
  0x6b   :  { %525 = vmatpush1.msra.mxu1 %v1545_v7 }
  0x6c   :  { %526 = vmatprep.subr.mxu1 %v1548_v8 }
  0x6d   :  { %527 = vmatpush1.msra.mxu1 %v1551_v9 }
  0x6e   :  { %528 = vmatprep.subr.mxu1 %v1553_v10 }
  0x6f   :  { %529 = vmatpush1.msra.mxu1 %v1563_v13 }
  0x70   :  { %530 = vmatprep.subr.mxu1 %v1566_v14 }
  0x71   :  { %531 = vmatpush1.msra.mxu1 %v1568_v15 }
  0x72   :  { %532 = vmatprep.subr.mxu1 %v1574_v17 }
  0x73   :  { %533 = vmatpush1.msra.mxu1 %v1577_v18 }
  0x74   :  { %534 = vmatprep.subr.mxu1 %v1580_v19 }
  0x75   :  { %535 = vmatpush1.msra.mxu1 %v1583_v20 }
  0x76   :  { %536 = vmatprep.subr.mxu1 %v1586_v23 }
  0x77   :  { %537 = vmatpush1.msra.mxu1 %v1589_v25 }
  0x78   :  { %538 = vmatprep.subr.mxu1 %v1592_v28 }
  0x79   :  { %539 = vmatpush1.msra.mxu1 %v1595_v30 }
  0x7a   :  { %540 = vmatprep.subr.mxu1 %v1598_v32 }
  0x7b   :  { %541 = vmatpush1.msra.mxu1 %v1601_v34 }
  0x7c   :  { %542 = vmatprep.subr.mxu1 %v1604_v36 }
  0x7d   :  { %543 = vmatpush1.msra.mxu1 %v1607_v38 }
  0x7e   :  { %544 = vmatprep.subr.mxu1 %v1610_v40 }
  0x7f   :  { %545 = vmatpush1.msra.mxu1 %v1613_v42 }
  0x80   :  { %546 = vmatprep.subr.mxu1 %v1616_v44 }
  0x81   :  { %547 = vmatpush1.msra.mxu1 %v1619_v46 }
  0x82   :  { %548 = vmatprep.subr.mxu1 %v1622_v48 }
  0x83   :  { %549 = vmatpush1.msra.mxu1 %v1625_v50 }
  0x84   :  { %550 = vmatprep.subr.mxu1 %v1628_v52 }
  0x85   :  { %551 = vmatpush1.msra.mxu1 %v1631_v54 }
  0x86   :  { %552 = vmatprep.subr.mxu1 %v1634_v56 }
  0x87   :  { %553 = vmatpush1.msra.mxu1 %v1637_v58 }
  0x88   :  { %554 = vmatprep.subr.mxu1 %v1640_v60 }
  0x89   :  { %555 = vmatpush1.msra.mxu1 %v1643_v62 }
  0x8a   :  { %556 = vmatprep.subr.mxu1 %v1646_v0 }
  0x8b   :  { %557 = vmatpush2.msra.mxu1 %v1649_v3 }
  0x8c   :  { %558 = vmatprep.subr.mxu1 %v1652_v5 }
  0x8d   :  { %559 = vmatpush2.msra.mxu1 %v1655_v12 }
  0x8e   :  { %560 = vmatprep.subr.mxu1 %v1658_v21 }
  0x8f   :  { %561 = vmatpush2.msra.mxu1 %v1661_v24 }
  0x90   :  { %562 = vmatprep.subr.mxu1 %v1664_v27 }
  0x91   :  { %563 = vmatpush2.msra.mxu1 %v1667_v31 }
  0x92   :  { %564 = vmatprep.subr.mxu1 %v1670_v35 }
  0x93   :  { %565 = vmatpush2.msra.mxu1 %v1673_v39 }
  0x94   :  { %566 = vmatprep.subr.mxu1 %v1679_v43  ;;  %v1807_v43 = vand.u32 127, %v2478_v26  ;;  %v2539_v26 = vmov 0.0  }
  0x95   :  { %567 = vmatpush2.msra.mxu1 %v1685_v47 }
  0x96   :  { %568 = vmatprep.subr.mxu1 %v1688_v49 }
  0x97   :  { %569 = vmatpush2.msra.mxu1 %v1691_v51 }
  0x98   :  { %570 = vmatprep.subr.mxu1 %v1694_v53 }
  0x99   :  { %571 = vmatpush2.msra.mxu1 %v1698_v55 }
  0x9a   :  { %572 = vmatprep.subr.mxu1 %v1701_v57 }
  0x9b   :  { %573 = vmatpush2.msra.mxu1 %v1704_v59  ;;  %v1470_v59 = vmov 1.0  }
  0x9c   :  { %574 = vmatprep.subr.mxu1 %v1707_v61  ;;  %v2538_v61 = vld [vmem:[#allocation29_spill] sm:$0xff] }
  0x9d   :  { %575 = vmatpush2.msra.mxu1 %v1710_v63 }
  0x9e   :  { %576 = vmatprep.subr.mxu1 %v1713_v2 }
  0x9f   :  { %577 = vmatpush2.msra.mxu1 %v1716_v4 }
  0xa0   :  { %578 = vmatprep.subr.mxu1 %v1719_v11 }
  0xa1   :  { %579 = vmatpush2.msra.mxu1 %v1722_v16 }
  0xa2   :  { %580 = vmatprep.subr.mxu1 %v1725_v22 }
  0xa3   :  { %581 = vmatpush2.msra.mxu1 %v2538_v61 }
  0xa4   :  { %v83_v53 = vpop.permute.xlu0 %82  ;;  %582 = vmatprep.subr.mxu1 %v1731_v29 }
  0xa5   :  { %vm105_vm0 = vcmp.eq.s32.totalorder %v83_v53, %v1807_v43  ;;  %v89_v63 = vpop.permute.xlu1 %88  ;;  %583 = vmatpush2.msra.mxu1 %v1734_v33 }
  0xa6   :  { %1178 = vmatmul.mubr.msk.f32.vlgmr.msra.gmra.mxu0 %vm105_vm0, %v1470_v59  ;;  %vm107_vm2 = vcmp.eq.s32.totalorder %v89_v63, %v1807_v43  ;;  %584 = vmatprep.subr.mxu1 %v1737_v37 }
  0xa7   :  { %243 = vmatprep.mubr.f32.mxu0 %v2539_v26  ;;  %448 = vmatpush1.msra.mxu0 %v1545_v7 }
  0xa8   :  { %v86_v4 = vpop.permute.xlu0 %85  ;;  %449 = vmatprep.subr.mxu0 %v1548_v8  ;;  %585 = vmatpush2.msra.mxu1 %v1740_v41 }
  0xa9   :  { %vm106_vm1 = vcmp.eq.s32.totalorder %v86_v4, %v1807_v43  ;;  %450 = vmatpush1.msra.mxu0 %v1551_v9  ;;  %v92_v53 = vpop.permute.xlu1 %91  ;;  %586 = vmatprep.subr.mxu1 %v1743_v45 }
  0xaa   :  { %1179 = vmatmul.mubr.msk.f32.gmra.mxu0 %vm106_vm1, %v1470_v59  ;;  %451 = vmatprep.subr.mxu0 %v1553_v10  ;;  %vm108_vm3 = vcmp.eq.s32.totalorder %v92_v53, %v1807_v43 }
  0xab   :  { %249 = vmatprep.mubr.f32.mxu0 %v2539_v26  ;;  %452 = vmatpush1.msra.mxu0 %v1563_v13 }
  0xac   :  { %453 = vmatprep.subr.mxu0 %v1566_v14  ;;  %587 = vmatpush2.msra.mxu1 %v1746_v1  ;;  %v95_v63 = vpop.permute.xlu0 %94 }
  0xad   :  { %454 = vmatpush1.msra.mxu0 %v1568_v15  ;;  %v98_v4 = vpop.permute.xlu1 %97  ;;  %678 = vmatprep.subr.mxu1 %v1543_v6  ;;  %vm109_vm4 = vcmp.eq.s32.totalorder %v95_v63, %v1807_v43 }
  0xae   :  { %1180 = vmatmul.mubr.msk.f32.gmra.mxu0 %vm107_vm2, %v1470_v59  ;;  %455 = vmatprep.subr.mxu0 %v1574_v17  ;;  %vm110_vm5 = vcmp.eq.s32.totalorder %v98_v4, %v1807_v43  ;;  %v2541_v4 = vld [vmem:[#allocation20_spill] sm:$0xff] }
  0xaf   :  { %255 = vmatprep.mubr.f32.mxu0 %v2539_v26  ;;  %456 = vmatpush1.msra.mxu0 %v1577_v18 }
  0xb0   :  { %457 = vmatprep.subr.mxu0 %v1580_v19  ;;  %v101_v53 = vpop.permute.xlu0 %100 }
  0xb1   :  { %458 = vmatpush1.msra.mxu0 %v1583_v20  ;;  %vm111_vm6 = vcmp.eq.s32.totalorder %v101_v53, %v1807_v43  ;;  %v2542_v53 = vld [vmem:[#allocation21_spill] sm:$0xff] }
  0xb2   :  { %1181 = vmatmul.mubr.msk.f32.gmra.mxu0 %vm108_vm3, %v1470_v59  ;;  %459 = vmatprep.subr.mxu0 %v1586_v23 }
  0xb3   :  { %261 = vmatprep.mubr.f32.mxu0 %v2539_v26  ;;  %460 = vmatpush1.msra.mxu0 %v1589_v25 }
  0xb4   :  { %461 = vmatprep.subr.mxu0 %v1592_v28 }
  0xb5   :  { %462 = vmatpush1.msra.mxu0 %v1595_v30 }
  0xb6   :  { %1182 = vmatmul.mubr.msk.f32.gmra.mxu0 %vm109_vm4, %v1470_v59  ;;  %463 = vmatprep.subr.mxu0 %v1598_v32 }
  0xb7   :  { %267 = vmatprep.mubr.f32.mxu0 %v2539_v26  ;;  %464 = vmatpush1.msra.mxu0 %v1601_v34 }
  0xb8   :  { %465 = vmatprep.subr.mxu0 %v1604_v36 }
  0xb9   :  { %466 = vmatpush1.msra.mxu0 %v1607_v38 }
  0xba   :  { %1183 = vmatmul.mubr.msk.f32.gmra.mxu0 %vm110_vm5, %v1470_v59  ;;  %467 = vmatprep.subr.mxu0 %v1610_v40 }
  0xbb   :  { %273 = vmatprep.mubr.f32.mxu0 %v2539_v26  ;;  %468 = vmatpush1.msra.mxu0 %v1613_v42 }
  0xbc   :  { %469 = vmatprep.subr.mxu0 %v1616_v44 }
  0xbd   :  { %470 = vmatpush1.msra.mxu0 %v1619_v46 }
  0xbe   :  { %1184 = vmatmul.mubr.msk.f32.gmra.mxu0 %vm111_vm6, %v1470_v59  ;;  %471 = vmatprep.subr.mxu0 %v1622_v48 }
  0xbf   :  { %472 = vmatpush1.msra.mxu0 %v1625_v50  ;;  %279 = vmatprep.mubr.f32.mxu0 %v2539_v26  ;;  %v2540_v26 = vld [vmem:[#allocation17_spill] sm:$0xff] }
  0xc0   :  { %473 = vmatprep.subr.mxu0 %v1628_v52 }
  0xc1   :  { %474 = vmatpush1.msra.mxu0 %v1631_v54 }
  0xc2   :  { %475 = vmatprep.subr.mxu0 %v1634_v56 }
  0xc3   :  { %476 = vmatpush1.msra.mxu0 %v1637_v58 }
  0xc4   :  { %477 = vmatprep.subr.mxu0 %v1640_v60 }
  0xc5   :  { %478 = vmatpush1.msra.mxu0 %v1643_v62 }
  0xc6   :  { %479 = vmatprep.subr.mxu0 %v1646_v0 }
  0xc7   :  { %480 = vmatpush2.msra.mxu0 %v1649_v3 }
  0xc8   :  { %481 = vmatprep.subr.mxu0 %v1652_v5 }
  0xc9   :  { %482 = vmatpush2.msra.mxu0 %v1655_v12 }
  0xca   :  { %483 = vmatprep.subr.mxu0 %v1658_v21 }
  0xcb   :  { %484 = vmatpush2.msra.mxu0 %v1661_v24 }
  0xcc   :  { %485 = vmatprep.subr.mxu0 %v1664_v27 }
  0xcd   :  { %486 = vmatpush2.msra.mxu0 %v1667_v31 }
  0xce   :  { %487 = vmatprep.subr.mxu0 %v1670_v35  ;;  %v104_v63 = vpop.permute.xlu1 %103 }
  0xcf   :  { %488 = vmatpush2.msra.mxu0 %v1673_v39  ;;  %vm112_vm7 = vcmp.eq.s32.totalorder %v104_v63, %v1807_v43  ;;  %v2546_v43 = vlaneseq }
  0xd0   :  { %489 = vmatprep.subr.mxu0 %v2540_v26  ;;  %1185 = vmatmul.mubr.msk.f32.gmra.mxu0 %vm112_vm7, %v1470_v59  ;;  %v2543_v26 = vld [vmem:[#allocation22_spill] sm:$0xff] }
  0xd1   :  { %490 = vmatpush2.msra.mxu0 %v1685_v47  ;;  %v2544_v47 = vld [vmem:[#allocation23_spill] sm:$0xff]  ;;  %v164_v59 = vshrl.u32 %v2546_v43, 7 }
  0xd2   :  { %491 = vmatprep.subr.mxu0 %v1688_v49  ;;  %v2545_v49 = vld [vmem:[#allocation25_spill] sm:$0xff] }
  0xd3   :  { %492 = vmatpush2.msra.mxu0 %v1691_v51  ;;  %v165_v63 = vsub.s32 0, %v164_v59 }
  0xd4   :  { %493 = vmatprep.subr.mxu0 %v2541_v4 }
  0xd5   :  { %494 = vmatpush2.msra.mxu0 %v1698_v55 }
  0xd6   :  { %495 = vmatprep.subr.mxu0 %v1701_v57 }
  0xd7   :  { %496 = vmatpush2.msra.mxu0 %v2542_v53 }
  0xd8   :  { %497 = vmatprep.subr.mxu0 %v2543_v26 }
  0xd9   :  { %498 = vmatpush2.msra.mxu0 %v2544_v47 }
  0xda   :  { %499 = vmatprep.subr.mxu0 %v1713_v2 }
  0xdb   :  { %500 = vmatpush2.msra.mxu0 %v2545_v49 }
  0xdc   :  { %501 = vmatprep.subr.mxu0 %v1719_v11 }
  0xdd   :  { %502 = vmatpush2.msra.mxu0 %v1722_v16 }
  0xde   :  { %503 = vmatprep.subr.mxu0 %v1725_v22 }
  0xdf   :  { %504 = vmatpush2.msra.mxu0 %v2538_v61  ;;  %v161_v61 = vld [vmem:[%s2459_s4] sm:$0x3] }
  0xe0   :  { %505 = vmatprep.subr.mxu0 %v1731_v29  ;;  %v169_v29 = vsub.s32 1, %v164_v59  ;;  %v1913_v22 = vrot.slane %v161_v61, %v165_v63 }
  0xe1   :  { %506 = vmatpush2.msra.mxu0 %v1734_v33 }
  0xe2   :  { %507 = vmatprep.subr.mxu0 %v1737_v37  ;;  %v1915_v33 = vrot.slane %v161_v61, %v169_v29 }
  0xe3   :  { %508 = vmatpush2.msra.mxu0 %v1740_v41 }
  0xe4   :  { %509 = vmatprep.subr.mxu0 %v1743_v45  ;;  %2547 = vst [vmem:[#allocation20_spill] sm:$0xff] %v1915_v33 }
  0xe5   :  { %510 = vmatpush2.msra.mxu0 %v1746_v1 }
  0xe6   :  { %601 = vmatprep.subr.mxu0 %v1543_v6 }
 0x12a   :  { %v436_v41 = vpop.f32.mrf.mxu1 }
 0x12c   :  { %v438_v11 = vpop.f32.mrf.mxu1 }
 0x166   :  { %v239_v37 = vpop.f32.mrf.mxu0 }
 0x167   :  { %v240_v45 = vadd.f32 %v239_v37, %v1913_v22 }
 0x168   :  { %v241_v16 = vpop.f32.mrf.mxu0 }
 0x169   :  { %v242_v1 = vadd.f32 %v241_v16, %v1915_v33  ;;  %v441_v6 = vadd.f32 %v436_v41, %v240_v45 }
 0x16a   :  { %v1919_v43 = vpop.f32.mrf.mxu0 }
 0x16b   :  { %v442_v49 = vadd.f32 %v438_v11, %v242_v1 }
 0x16c   :  { %v1921_v2 = vpop.f32.mrf.mxu0 }
 0x16d   :  { %1257 = vtanh.f32 %v442_v49 }
 0x16e   :  { %1259 = vtanh.f32 %v441_v6  ;;  %v251_v59 = vpop.f32.mrf.mxu0 }
 0x16f   :  { %v1924_v61 = vadd.f32 %v251_v59, %v1913_v22 }
 0x170   :  { %v253_v29 = vpop.f32.mrf.mxu0 }
 0x171   :  { %2548 = vst [vmem:[#allocation21_spill] sm:$0xff] %v1924_v61  ;;  %v1927_v63 = vadd.f32 %v253_v29, %v1915_v33  ;;  %v2572_v61 = vld [vmem:[#allocation32_spill] sm:$0xff] }
 0x172   :  { %v257_v37 = vpop.f32.mrf.mxu0 }
 0x173   :  { %2549 = vst [vmem:[#allocation36_spill] sm:$0xff] %v1927_v63  ;;  %v1930_v16 = vadd.f32 %v257_v37, %v1913_v22 }
 0x174   :  { %v259_v41 = vpop.f32.mrf.mxu0 }
 0x175   :  { %2550 = vst [vmem:[#allocation37_spill] sm:$0xff] %v1930_v16  ;;  %v1933_v45 = vadd.f32 %v259_v41, %v1915_v33  ;;  %v2571_v16 = vld [vmem:[#allocation31_spill] sm:$0xff] }
 0x176   :  { %v263_v1 = vpop.f32.mrf.mxu0 }
 0x177   :  { %2551 = vst [vmem:[#allocation38_spill] sm:$0xff] %v1933_v45  ;;  %v1936_v49 = vadd.f32 %v263_v1, %v1913_v22  ;;  %v2570_v45 = vld [vmem:[#allocation30_spill] sm:$0xff] }
 0x178   :  { %v265_v6 = vpop.f32.mrf.mxu0 }
 0x179   :  { %2552 = vst [vmem:[#allocation39_spill] sm:$0xff] %v1936_v49  ;;  %v1939_v11 = vadd.f32 %v265_v6, %v1915_v33  ;;  %v2569_v49 = vld [vmem:[#allocation29_spill] sm:$0xff] }
 0x17a   :  { %v1941_v59 = vpop.eup %1257  ;;  %v269_v29 = vpop.f32.mrf.mxu0 }
 0x17b   :  { %2553 = vst [vmem:[#allocation40_spill] sm:$0xff] %v1939_v11  ;;  %2554 = vst [vmem:[#allocation41_spill] sm:$0xff] %v1941_v59  ;;  %v1943_v63 = vpop.eup %1259  ;;  %v1946_v37 = vadd.f32 %v269_v29, %v1913_v22  ;;  %511 = vmatprep.mubr.f32.mxu0 %v1941_v59 }
 0x17c   :  { %2555 = vst [vmem:[#allocation42_spill] sm:$0xff] %v1943_v63  ;;  %v271_v41 = vpop.f32.mrf.mxu0  ;;  %512 = vmatmul.mubr.f32.vlgmr.msra.gmra.mxu0 %v1943_v63  ;;  %v2566_v63 = vld [vmem:[#allocation26_spill] sm:$0xff] }
 0x17d   :  { %2556 = vst [vmem:[#allocation43_spill] sm:$0xff] %v1946_v37  ;;  %v1951_v1 = vadd.f32 %v271_v41, %v1915_v33  ;;  %602 = vmatpush1.msra.mxu0 %v1545_v7  ;;  %v2568_v37 = vld [vmem:[#allocation28_spill] sm:$0xff] }
 0x17e   :  { %v275_v6 = vpop.f32.mrf.mxu0  ;;  %603 = vmatprep.subr.mxu0 %v1548_v8 }
 0x17f   :  { %2557 = vst [vmem:[#allocation44_spill] sm:$0xff] %v1951_v1  ;;  %v1956_v11 = vadd.f32 %v275_v6, %v1913_v22  ;;  %604 = vmatpush1.msra.mxu0 %v1551_v9  ;;  %v2567_v1 = vld [vmem:[#allocation27_spill] sm:$0xff] }
 0x180   :  { %v277_v29 = vpop.f32.mrf.mxu0  ;;  %605 = vmatprep.subr.mxu0 %v1553_v10 }
 0x181   :  { %2558 = vst [vmem:[#allocation45_spill] sm:$0xff] %v1956_v11  ;;  %v1961_v59 = vadd.f32 %v277_v29, %v1915_v33  ;;  %606 = vmatpush1.msra.mxu0 %v1563_v13  ;;  %v2561_v29 = vld [vmem:[#allocation17_spill] sm:$0xff] }
 0x182   :  { %607 = vmatprep.subr.mxu0 %v1566_v14  ;;  %v2565_v11 = vld [vmem:[#allocation25_spill] sm:$0xff] }
 0x183   :  { %2559 = vst [vmem:[#allocation46_spill] sm:$0xff] %v1961_v59  ;;  %608 = vmatpush1.msra.mxu0 %v1568_v15  ;;  %v2564_v59 = vld [vmem:[#allocation24_spill] sm:$0xff] }
 0x184   :  { %609 = vmatprep.subr.mxu0 %v1574_v17 }
 0x185   :  { %610 = vmatpush1.msra.mxu0 %v1577_v18 }
 0x186   :  { %611 = vmatprep.subr.mxu0 %v1580_v19 }
 0x187   :  { %612 = vmatpush1.msra.mxu0 %v1583_v20 }
 0x188   :  { %613 = vmatprep.subr.mxu0 %v1586_v23 }
 0x189   :  { %614 = vmatpush1.msra.mxu0 %v1589_v25 }
 0x18a   :  { %615 = vmatprep.subr.mxu0 %v1592_v28 }
 0x18b   :  { %616 = vmatpush1.msra.mxu0 %v1595_v30 }
 0x18c   :  { %617 = vmatprep.subr.mxu0 %v1598_v32 }
 0x18d   :  { %618 = vmatpush1.msra.mxu0 %v1601_v34 }
 0x18e   :  { %619 = vmatprep.subr.mxu0 %v1604_v36 }
 0x18f   :  { %620 = vmatpush1.msra.mxu0 %v1607_v38 }
 0x190   :  { %621 = vmatprep.subr.mxu0 %v1610_v40  ;;  %v281_v41 = vpop.f32.mrf.mxu0 }
 0x191   :  { %622 = vmatpush1.msra.mxu0 %v1613_v42  ;;  %v1984_v6 = vadd.f32 %v281_v41, %v1913_v22  ;;  %v2562_v41 = vld [vmem:[#allocation18_spill] sm:$0xff] }
 0x192   :  { %623 = vmatprep.subr.mxu0 %v1616_v44 }
 0x193   :  { %624 = vmatpush1.msra.mxu0 %v1619_v46  ;;  %2560 = vst [vmem:[#allocation47_spill] sm:$0xff] %v1984_v6  ;;  %v2563_v6 = vld [vmem:[#allocation19_spill] sm:$0xff] }
 0x194   :  { %625 = vmatprep.subr.mxu0 %v1622_v48 }
 0x195   :  { %626 = vmatpush1.msra.mxu0 %v1625_v50 }
 0x196   :  { %627 = vmatprep.subr.mxu0 %v1628_v52 }
 0x197   :  { %628 = vmatpush1.msra.mxu0 %v1631_v54 }
 0x198   :  { %629 = vmatprep.subr.mxu0 %v1634_v56 }
 0x199   :  { %630 = vmatpush1.msra.mxu0 %v1637_v58 }
 0x19a   :  { %631 = vmatprep.subr.mxu0 %v1640_v60 }
 0x19b   :  { %632 = vmatpush1.msra.mxu0 %v1643_v62 }
 0x19c   :  { %633 = vmatprep.subr.mxu0 %v1646_v0 }
 0x19d   :  { %634 = vmatpush2.msra.mxu0 %v1649_v3 }
 0x19e   :  { %635 = vmatprep.subr.mxu0 %v1652_v5 }
 0x19f   :  { %636 = vmatpush2.msra.mxu0 %v1655_v12 }
 0x1a0   :  { %637 = vmatprep.subr.mxu0 %v1658_v21 }
 0x1a1   :  { %638 = vmatpush2.msra.mxu0 %v1661_v24 }
 0x1a2   :  { %639 = vmatprep.subr.mxu0 %v1664_v27 }
 0x1a3   :  { %640 = vmatpush2.msra.mxu0 %v1667_v31 }
 0x1a4   :  { %641 = vmatprep.subr.mxu0 %v1670_v35 }
 0x1a5   :  { %642 = vmatpush2.msra.mxu0 %v1673_v39 }
 0x1a6   :  { %643 = vmatprep.subr.mxu0 %v2561_v29 }
 0x1a7   :  { %644 = vmatpush2.msra.mxu0 %v2562_v41 }
 0x1a8   :  { %645 = vmatprep.subr.mxu0 %v2563_v6 }
 0x1a9   :  { %646 = vmatpush2.msra.mxu0 %v1691_v51 }
 0x1aa   :  { %647 = vmatprep.subr.mxu0 %v2541_v4 }
 0x1ab   :  { %648 = vmatpush2.msra.mxu0 %v1698_v55 }
 0x1ac   :  { %649 = vmatprep.subr.mxu0 %v1701_v57 }
 0x1ad   :  { %650 = vmatpush2.msra.mxu0 %v2542_v53 }
 0x1ae   :  { %651 = vmatprep.subr.mxu0 %v2543_v26  ;;  %v2573_v26 = vld [vmem:[#allocation33_spill] sm:$0xff] }
 0x1af   :  { %652 = vmatpush2.msra.mxu0 %v2544_v47  ;;  %v2574_v47 = vld [vmem:[#allocation34_spill] sm:$0xff] }
 0x1b0   :  { %653 = vmatprep.subr.mxu0 %v2564_v59  ;;  %v2575_v59 = vld [vmem:[#allocation35_spill] sm:$0xff] }
 0x1b1   :  { %654 = vmatpush2.msra.mxu0 %v2565_v11  ;;  %v2576_v11 = vld [vmem:[#allocation16_spill] sm:$0xff] }
 0x1b2   :  { %655 = vmatprep.subr.mxu0 %v2566_v63  ;;  %v2026_v63 = vpop.f32.mrf.mxu0 }
 0x1b3   :  { %656 = vmatpush2.msra.mxu0 %v2567_v1  ;;  %2577 = vst [vmem:[#allocation17_spill] sm:$0xff] %v2026_v63  ;;  %v2160_v63 = vld [vmem:[#allocation6 + $0x70] sm:$0xff] }
 0x1b4   :  { %657 = vmatprep.subr.mxu0 %v2568_v37  ;;  %v246_v37 = vadd.f32 %v1919_v43, %v1913_v22  ;;  %v2115_v22 = vld [vmem:[#allocation6 + $0xe8] sm:$0xff]  ;;  %v2118_v43 = vld [vmem:[#allocation6 + $0xe0] sm:$0xff] }
 0x1b5   :  { %658 = vmatpush2.msra.mxu0 %v2569_v49 }
 0x1b6   :  { %659 = vmatprep.subr.mxu0 %v2570_v45  ;;  %v248_v45 = vadd.f32 %v1921_v2, %v1915_v33  ;;  %v2112_v2 = vld [vmem:[#allocation6 + $0xf0] sm:$0xff]  ;;  %v2163_v33 = vld [vmem:[#allocation6 + $0x68] sm:$0xff] }
 0x1b7   :  { %660 = vmatpush2.msra.mxu0 %v2571_v16 }
 0x1b8   :  { %661 = vmatprep.subr.mxu0 %v2572_v61 }
 0x1b9   :  { %662 = vmatpush2.msra.mxu0 %v2573_v26 }
 0x1ba   :  { %663 = vmatprep.subr.mxu0 %v2574_v47 }
 0x1bb   :  { %664 = vmatpush2.msra.mxu0 %v2575_v59 }
 0x1bc   :  { %755 = vmatprep.subr.mxu0 %v2576_v11  ;;  %v2133_v11 = vld [vmem:[#allocation6 + $0xb8] sm:$0xff] }
 0x23c   :  { %v513_v49 = vpop.f32.mrf.mxu0 }
 0x23d   :  { %v518_v16 = vadd.f32 %v513_v49, %v246_v37  ;;  %v2130_v49 = vld [vmem:[#allocation6 + $0xc0] sm:$0xff]  ;;  %v2136_v37 = vld [vmem:[#allocation6 + $0xb0] sm:$0xff] }
 0x23e   :  { %v515_v1 = vpop.f32.mrf.mxu0 }
 0x23f   :  { %v519_v61 = vadd.f32 %v515_v1, %v248_v45  ;;  %v2127_v45 = vld [vmem:[#allocation6 + $0xc8] sm:$0xff] }
 0x240   :  { %v2139_v1 = vld [vmem:[#allocation6 + $0xa8] sm:$0xff] }
 0x241   :  { %1261 = vtanh.f32 %v519_v61  ;;  %v2121_v61 = vld [vmem:[#allocation6 + $0xd8] sm:$0xff] }
 0x242   :  { %1263 = vtanh.f32 %v518_v16  ;;  %v2124_v16 = vld [vmem:[#allocation6 + $0xd0] sm:$0xff] }
 0x24e   :  { %v2032_v26 = vpop.eup %1261 }
 0x24f   :  { %2578 = vst [vmem:[#allocation18_spill] sm:$0xff] %v2032_v26  ;;  %v2034_v47 = vpop.eup %1263  ;;  %588 = vmatprep.mubr.f32.mxu1 %v2032_v26  ;;  %v2175_v26 = vld [vmem:[#allocation6 + $0x48] sm:$0xff] }
 0x250   :  { %2579 = vst [vmem:[#allocation19_spill] sm:$0xff] %v2034_v47  ;;  %589 = vmatmul.mubr.f32.vlgmr.msra.gmra.mxu1 %v2034_v47  ;;  %v2172_v47 = vld [vmem:[#allocation6 + $0x50] sm:$0xff] }
 0x251   :  { %679 = vmatpush1.msra.mxu1 %v1545_v7  ;;  %v2580_v7 = vld [vmem:[#allocation22_spill] sm:$0xff] }
 0x252   :  { %680 = vmatprep.subr.mxu1 %v1548_v8  ;;  %v2581_v8 = vld [vmem:[#allocation23_spill] sm:$0xff] }
 0x253   :  { %681 = vmatpush1.msra.mxu1 %v1551_v9  ;;  %v2582_v9 = vld [vmem:[#allocation24_spill] sm:$0xff] }
 0x254   :  { %682 = vmatprep.subr.mxu1 %v1553_v10  ;;  %v2583_v10 = vld [vmem:[#allocation25_spill] sm:$0xff] }
 0x255   :  { %683 = vmatpush1.msra.mxu1 %v1563_v13  ;;  %v2584_v13 = vld [vmem:[#allocation26_spill] sm:$0xff] }
 0x256   :  { %684 = vmatprep.subr.mxu1 %v1566_v14  ;;  %v2585_v14 = vld [vmem:[#allocation27_spill] sm:$0xff] }
 0x257   :  { %685 = vmatpush1.msra.mxu1 %v1568_v15  ;;  %v2586_v15 = vld [vmem:[#allocation28_spill] sm:$0xff] }
 0x258   :  { %686 = vmatprep.subr.mxu1 %v1574_v17  ;;  %v2587_v17 = vld [vmem:[#allocation29_spill] sm:$0xff] }
 0x259   :  { %687 = vmatpush1.msra.mxu1 %v1577_v18  ;;  %v2588_v18 = vld [vmem:[#allocation30_spill] sm:$0xff] }
 0x25a   :  { %688 = vmatprep.subr.mxu1 %v1580_v19  ;;  %v2589_v19 = vld [vmem:[#allocation31_spill] sm:$0xff] }
 0x25b   :  { %689 = vmatpush1.msra.mxu1 %v1583_v20  ;;  %v2590_v20 = vld [vmem:[#allocation32_spill] sm:$0xff] }
 0x25c   :  { %690 = vmatprep.subr.mxu1 %v1586_v23  ;;  %v2591_v23 = vld [vmem:[#allocation33_spill] sm:$0xff] }
 0x25d   :  { %691 = vmatpush1.msra.mxu1 %v1589_v25  ;;  %v2592_v25 = vld [vmem:[#allocation34_spill] sm:$0xff] }
 0x25e   :  { %692 = vmatprep.subr.mxu1 %v1592_v28  ;;  %v2101_v28 = vld [vmem:[#allocation6 + $0xf8] sm:$0xff] }
 0x25f   :  { %693 = vmatpush1.msra.mxu1 %v1595_v30 }
 0x260   :  { %694 = vmatprep.subr.mxu1 %v1598_v32  ;;  %v2593_v32 = vld [vmem:[#allocation21_spill] sm:$0xff] }
 0x261   :  { %695 = vmatpush1.msra.mxu1 %v1601_v34 }
 0x262   :  { %696 = vmatprep.subr.mxu1 %v1604_v36 }
 0x263   :  { %697 = vmatpush1.msra.mxu1 %v1607_v38  ;;  %v2594_v38 = vld [vmem:[#allocation36_spill] sm:$0xff] }
 0x264   :  { %698 = vmatprep.subr.mxu1 %v1610_v40 }
 0x265   :  { %699 = vmatpush1.msra.mxu1 %v1613_v42 }
 0x266   :  { %700 = vmatprep.subr.mxu1 %v1616_v44 }
 0x267   :  { %701 = vmatpush1.msra.mxu1 %v1619_v46 }
 0x268   :  { %702 = vmatprep.subr.mxu1 %v1622_v48 }
 0x269   :  { %703 = vmatpush1.msra.mxu1 %v1625_v50 }
 0x26a   :  { %704 = vmatprep.subr.mxu1 %v1628_v52 }
 0x26b   :  { %705 = vmatpush1.msra.mxu1 %v1631_v54 }
 0x26c   :  { %706 = vmatprep.subr.mxu1 %v1634_v56 }
 0x26d   :  { %707 = vmatpush1.msra.mxu1 %v1637_v58 }
 0x26e   :  { %708 = vmatprep.subr.mxu1 %v1640_v60 }
 0x26f   :  { %709 = vmatpush1.msra.mxu1 %v1643_v62 }
 0x270   :  { %710 = vmatprep.subr.mxu1 %v1646_v0 }
 0x271   :  { %711 = vmatpush2.msra.mxu1 %v1649_v3 }
 0x272   :  { %712 = vmatprep.subr.mxu1 %v1652_v5 }
 0x273   :  { %713 = vmatpush2.msra.mxu1 %v1655_v12 }
 0x274   :  { %714 = vmatprep.subr.mxu1 %v1658_v21 }
 0x275   :  { %715 = vmatpush2.msra.mxu1 %v1661_v24 }
 0x276   :  { %716 = vmatprep.subr.mxu1 %v1664_v27 }
 0x277   :  { %717 = vmatpush2.msra.mxu1 %v1667_v31 }
 0x278   :  { %718 = vmatprep.subr.mxu1 %v1670_v35 }
 0x279   :  { %719 = vmatpush2.msra.mxu1 %v1673_v39 }
 0x27a   :  { %720 = vmatprep.subr.mxu1 %v2561_v29 }
 0x27b   :  { %721 = vmatpush2.msra.mxu1 %v2562_v41 }
 0x27c   :  { %722 = vmatprep.subr.mxu1 %v2563_v6 }
 0x27d   :  { %723 = vmatpush2.msra.mxu1 %v1691_v51 }
 0x27e   :  { %724 = vmatprep.subr.mxu1 %v2541_v4 }
 0x27f   :  { %725 = vmatpush2.msra.mxu1 %v1698_v55 }
 0x280   :  { %726 = vmatprep.subr.mxu1 %v1701_v57 }
 0x281   :  { %727 = vmatpush2.msra.mxu1 %v2542_v53 }
 0x282   :  { %728 = vmatprep.subr.mxu1 %v2580_v7 }
 0x283   :  { %729 = vmatpush2.msra.mxu1 %v2581_v8 }
 0x284   :  { %730 = vmatprep.subr.mxu1 %v2582_v9 }
 0x285   :  { %731 = vmatpush2.msra.mxu1 %v2583_v10 }
 0x286   :  { %732 = vmatprep.subr.mxu1 %v2584_v13 }
 0x287   :  { %733 = vmatpush2.msra.mxu1 %v2585_v14 }
 0x288   :  { %734 = vmatprep.subr.mxu1 %v2586_v15 }
 0x289   :  { %735 = vmatpush2.msra.mxu1 %v2587_v17 }
 0x28a   :  { %736 = vmatprep.subr.mxu1 %v2588_v18 }
 0x28b   :  { %737 = vmatpush2.msra.mxu1 %v2589_v19 }
 0x28c   :  { %738 = vmatprep.subr.mxu1 %v2590_v20 }
 0x28d   :  { %739 = vmatpush2.msra.mxu1 %v2591_v23 }
 0x28e   :  { %740 = vmatprep.subr.mxu1 %v2592_v25 }
 0x28f   :  { %741 = vmatpush2.msra.mxu1 %v2575_v59 }
 0x290   :  { %832 = vmatprep.subr.mxu1 %v2101_v28 }
 0x310   :  { %v590_v30 = vpop.f32.mrf.mxu1 }
 0x311   :  { %v595_v34 = vadd.f32 %v590_v30, %v2593_v32  ;;  %v2142_v30 = vld [vmem:[#allocation6 + $0xa0] sm:$0xff]  ;;  %v2145_v32 = vld [vmem:[#allocation6 + $0x98] sm:$0xff] }
 0x312   :  { %v592_v36 = vpop.f32.mrf.mxu1 }
 0x313   :  { %v596_v40 = vadd.f32 %v592_v36, %v2594_v38  ;;  %v2151_v36 = vld [vmem:[#allocation6 + $0x88] sm:$0xff]  ;;  %v2154_v38 = vld [vmem:[#allocation6 + $0x80] sm:$0xff] }
 0x315   :  { %1265 = vtanh.f32 %v596_v40  ;;  %v2157_v40 = vld [vmem:[#allocation6 + $0x78] sm:$0xff] }
 0x316   :  { %1267 = vtanh.f32 %v595_v34  ;;  %v2148_v34 = vld [vmem:[#allocation6 + $0x90] sm:$0xff] }
 0x322   :  { %v2106_v42 = vpop.eup %1265 }
 0x323   :  { %2595 = vst [vmem:[#allocation35_spill] sm:$0xff] %v2106_v42  ;;  %v2108_v44 = vpop.eup %1267  ;;  %665 = vmatprep.mubr.f32.mxu0 %v2106_v42  ;;  %v2169_v42 = vld [vmem:[#allocation6 + $0x58] sm:$0xff] }
 0x324   :  { %2596 = vst [vmem:[#allocation16_spill] sm:$0xff] %v2108_v44  ;;  %666 = vmatmul.mubr.f32.vlgmr.msra.gmra.mxu0 %v2108_v44  ;;  %v2166_v44 = vld [vmem:[#allocation6 + $0x60] sm:$0xff] }
 0x325   :  { %756 = vmatpush1.msra.mxu0 %v2112_v2 }
 0x326   :  { %757 = vmatprep.subr.mxu0 %v2115_v22 }
 0x327   :  { %758 = vmatpush1.msra.mxu0 %v2118_v43 }
 0x328   :  { %759 = vmatprep.subr.mxu0 %v2121_v61 }
 0x329   :  { %760 = vmatpush1.msra.mxu0 %v2124_v16 }
 0x32a   :  { %761 = vmatprep.subr.mxu0 %v2127_v45 }
 0x32b   :  { %762 = vmatpush1.msra.mxu0 %v2130_v49 }
 0x32c   :  { %763 = vmatprep.subr.mxu0 %v2133_v11 }
 0x32d   :  { %764 = vmatpush1.msra.mxu0 %v2136_v37 }
 0x32e   :  { %765 = vmatprep.subr.mxu0 %v2139_v1 }
 0x32f   :  { %766 = vmatpush1.msra.mxu0 %v2142_v30 }
 0x330   :  { %767 = vmatprep.subr.mxu0 %v2145_v32 }
 0x331   :  { %768 = vmatpush1.msra.mxu0 %v2148_v34 }
 0x332   :  { %769 = vmatprep.subr.mxu0 %v2151_v36 }
 0x333   :  { %770 = vmatpush1.msra.mxu0 %v2154_v38 }
 0x334   :  { %771 = vmatprep.subr.mxu0 %v2157_v40 }
 0x335   :  { %772 = vmatpush1.msra.mxu0 %v2160_v63 }
 0x336   :  { %773 = vmatprep.subr.mxu0 %v2163_v33 }
 0x337   :  { %774 = vmatpush1.msra.mxu0 %v2166_v44 }
 0x338   :  { %775 = vmatprep.subr.mxu0 %v2169_v42 }
 0x339   :  { %776 = vmatpush1.msra.mxu0 %v2172_v47 }
 0x33a   :  { %777 = vmatprep.subr.mxu0 %v2175_v26 }
 0x33b   :  { %778 = vmatpush1.msra.mxu0 %v1619_v46 }
 0x33c   :  { %779 = vmatprep.subr.mxu0 %v1622_v48  ;;  %v2597_v48 = vld [vmem:[#allocation37_spill] sm:$0xff] }
 0x33d   :  { %780 = vmatpush1.msra.mxu0 %v1625_v50 }
 0x33e   :  { %781 = vmatprep.subr.mxu0 %v1628_v52 }
 0x33f   :  { %782 = vmatpush1.msra.mxu0 %v1631_v54  ;;  %v2598_v54 = vld [vmem:[#allocation38_spill] sm:$0xff] }
 0x340   :  { %783 = vmatprep.subr.mxu0 %v1634_v56 }
 0x341   :  { %784 = vmatpush1.msra.mxu0 %v1637_v58 }
 0x342   :  { %785 = vmatprep.subr.mxu0 %v1640_v60 }
 0x343   :  { %786 = vmatpush1.msra.mxu0 %v1643_v62  ;;  %v2250_v62 = vld [vmem:[#allocation6 + $0x40] sm:$0xff] }
 0x344   :  { %787 = vmatprep.subr.mxu0 %v1646_v0  ;;  %v2253_v0 = vld [vmem:[#allocation6 + $0x38] sm:$0xff] }
 0x345   :  { %788 = vmatpush2.msra.mxu0 %v1649_v3  ;;  %v2256_v3 = vld [vmem:[#allocation6 + $0x30] sm:$0xff] }
 0x346   :  { %789 = vmatprep.subr.mxu0 %v1652_v5  ;;  %v2259_v5 = vld [vmem:[#allocation6 + $0x28] sm:$0xff] }
 0x347   :  { %790 = vmatpush2.msra.mxu0 %v1655_v12  ;;  %v2262_v12 = vld [vmem:[#allocation6 + $0x20] sm:$0xff] }
 0x348   :  { %791 = vmatprep.subr.mxu0 %v1658_v21  ;;  %v2265_v21 = vld [vmem:[#allocation6 + $0x18] sm:$0xff] }
 0x349   :  { %792 = vmatpush2.msra.mxu0 %v1661_v24  ;;  %v2268_v24 = vld [vmem:[#allocation6 + $0x10] sm:$0xff] }
 0x34a   :  { %793 = vmatprep.subr.mxu0 %v1664_v27  ;;  %v2271_v27 = vld [vmem:[#allocation6 + $0x8] sm:$0xff] }
 0x34b   :  { %794 = vmatpush2.msra.mxu0 %v1667_v31  ;;  %v2274_v31 = vld [vmem:[#allocation6] sm:$0xff] }
 0x34c   :  { %795 = vmatprep.subr.mxu0 %v1670_v35  ;;  %v2277_v35 = vld [vmem:[#allocation6 + $0x1f8] sm:$0xff] }
 0x34d   :  { %796 = vmatpush2.msra.mxu0 %v1673_v39  ;;  %v2280_v39 = vld [vmem:[#allocation6 + $0x1f0] sm:$0xff] }
 0x34e   :  { %797 = vmatprep.subr.mxu0 %v2561_v29  ;;  %v2301_v29 = vld [vmem:[#allocation6 + $0x1b8] sm:$0xff] }
 0x34f   :  { %798 = vmatpush2.msra.mxu0 %v2562_v41  ;;  %v2304_v41 = vld [vmem:[#allocation6 + $0x1b0] sm:$0xff] }
 0x350   :  { %799 = vmatprep.subr.mxu0 %v2563_v6  ;;  %v2298_v6 = vld [vmem:[#allocation6 + $0x1c0] sm:$0xff] }
 0x351   :  { %800 = vmatpush2.msra.mxu0 %v1691_v51  ;;  %v2283_v51 = vld [vmem:[#allocation6 + $0x1e8] sm:$0xff] }
 0x352   :  { %801 = vmatprep.subr.mxu0 %v2541_v4  ;;  %v2292_v4 = vld [vmem:[#allocation6 + $0x1d0] sm:$0xff] }
 0x353   :  { %802 = vmatpush2.msra.mxu0 %v1698_v55  ;;  %v2286_v55 = vld [vmem:[#allocation6 + $0x1e0] sm:$0xff] }
 0x354   :  { %803 = vmatprep.subr.mxu0 %v1701_v57  ;;  %v2289_v57 = vld [vmem:[#allocation6 + $0x1d8] sm:$0xff] }
 0x355   :  { %804 = vmatpush2.msra.mxu0 %v2542_v53  ;;  %v2295_v53 = vld [vmem:[#allocation6 + $0x1c8] sm:$0xff] }
 0x356   :  { %805 = vmatprep.subr.mxu0 %v2580_v7  ;;  %v2307_v7 = vld [vmem:[#allocation6 + $0x1a8] sm:$0xff] }
 0x357   :  { %806 = vmatpush2.msra.mxu0 %v2581_v8  ;;  %v2310_v8 = vld [vmem:[#allocation6 + $0x1a0] sm:$0xff] }
 0x358   :  { %807 = vmatprep.subr.mxu0 %v2582_v9 }
 0x359   :  { %808 = vmatpush2.msra.mxu0 %v2583_v10 }
 0x35a   :  { %809 = vmatprep.subr.mxu0 %v2584_v13 }
 0x35b   :  { %810 = vmatpush2.msra.mxu0 %v2585_v14 }
 0x35c   :  { %811 = vmatprep.subr.mxu0 %v2586_v15 }
 0x35d   :  { %812 = vmatpush2.msra.mxu0 %v2587_v17 }
 0x35e   :  { %813 = vmatprep.subr.mxu0 %v2588_v18 }
 0x35f   :  { %814 = vmatpush2.msra.mxu0 %v2589_v19 }
 0x360   :  { %815 = vmatprep.subr.mxu0 %v2590_v20 }
 0x361   :  { %816 = vmatpush2.msra.mxu0 %v2591_v23 }
 0x362   :  { %817 = vmatprep.subr.mxu0 %v2592_v25 }
 0x363   :  { %818 = vmatpush2.msra.mxu0 %v2575_v59 }
 0x364   :  { %909 = vmatprep.subr.mxu0 %v2101_v28  ;;  %v2313_v28 = vld [vmem:[#allocation6 + $0x198] sm:$0xff] }
 0x3e4   :  { %v667_v46 = vpop.f32.mrf.mxu0 }
 0x3e5   :  { %v672_v50 = vadd.f32 %v667_v46, %v2597_v48  ;;  %v2316_v46 = vld [vmem:[#allocation6 + $0x190] sm:$0xff]  ;;  %v2319_v48 = vld [vmem:[#allocation6 + $0x188] sm:$0xff] }
 0x3e6   :  { %v669_v52 = vpop.f32.mrf.mxu0 }
 0x3e7   :  { %v673_v56 = vadd.f32 %v669_v52, %v2598_v54  ;;  %v2325_v52 = vld [vmem:[#allocation6 + $0x178] sm:$0xff]  ;;  %v2328_v54 = vld [vmem:[#allocation6 + $0x170] sm:$0xff] }
 0x3e9   :  { %1269 = vtanh.f32 %v673_v56  ;;  %v2331_v56 = vld [vmem:[#allocation6 + $0x168] sm:$0xff] }
 0x3ea   :  { %1271 = vtanh.f32 %v672_v50  ;;  %v2322_v50 = vld [vmem:[#allocation6 + $0x180] sm:$0xff] }
 0x3f6   :  { %v2222_v58 = vpop.eup %1269 }
 0x3f7   :  { %2599 = vst [vmem:[#allocation22_spill] sm:$0xff] %v2222_v58  ;;  %v2224_v60 = vpop.eup %1271  ;;  %742 = vmatprep.mubr.f32.mxu1 %v2222_v58  ;;  %v2602_v58 = vld [vmem:[#allocation40_spill] sm:$0xff] }
 0x3f8   :  { %2600 = vst [vmem:[#allocation23_spill] sm:$0xff] %v2224_v60  ;;  %743 = vmatmul.mubr.f32.vlgmr.msra.gmra.mxu1 %v2224_v60  ;;  %v2334_v60 = vld [vmem:[#allocation6 + $0x160] sm:$0xff] }
 0x3f9   :  { %833 = vmatpush1.msra.mxu1 %v2112_v2 }
 0x3fa   :  { %834 = vmatprep.subr.mxu1 %v2115_v22 }
 0x3fb   :  { %835 = vmatpush1.msra.mxu1 %v2118_v43 }
 0x3fc   :  { %836 = vmatprep.subr.mxu1 %v2121_v61 }
 0x3fd   :  { %837 = vmatpush1.msra.mxu1 %v2124_v16 }
 0x3fe   :  { %838 = vmatprep.subr.mxu1 %v2127_v45 }
 0x3ff   :  { %839 = vmatpush1.msra.mxu1 %v2130_v49 }
 0x400   :  { %840 = vmatprep.subr.mxu1 %v2133_v11 }
 0x401   :  { %841 = vmatpush1.msra.mxu1 %v2136_v37 }
 0x402   :  { %842 = vmatprep.subr.mxu1 %v2139_v1 }
 0x403   :  { %843 = vmatpush1.msra.mxu1 %v2142_v30 }
 0x404   :  { %844 = vmatprep.subr.mxu1 %v2145_v32 }
 0x405   :  { %845 = vmatpush1.msra.mxu1 %v2148_v34 }
 0x406   :  { %846 = vmatprep.subr.mxu1 %v2151_v36 }
 0x407   :  { %847 = vmatpush1.msra.mxu1 %v2154_v38 }
 0x408   :  { %848 = vmatprep.subr.mxu1 %v2157_v40 }
 0x409   :  { %849 = vmatpush1.msra.mxu1 %v2160_v63 }
 0x40a   :  { %850 = vmatprep.subr.mxu1 %v2163_v33 }
 0x40b   :  { %851 = vmatpush1.msra.mxu1 %v2166_v44 }
 0x40c   :  { %852 = vmatprep.subr.mxu1 %v2169_v42 }
 0x40d   :  { %853 = vmatpush1.msra.mxu1 %v2172_v47 }
 0x40e   :  { %854 = vmatprep.subr.mxu1 %v2175_v26 }
 0x40f   :  { %855 = vmatpush1.msra.mxu1 %v2250_v62 }
 0x410   :  { %856 = vmatprep.subr.mxu1 %v2253_v0 }
 0x411   :  { %857 = vmatpush1.msra.mxu1 %v2256_v3 }
 0x412   :  { %858 = vmatprep.subr.mxu1 %v2259_v5 }
 0x413   :  { %859 = vmatpush1.msra.mxu1 %v2262_v12 }
 0x414   :  { %860 = vmatprep.subr.mxu1 %v2265_v21 }
 0x415   :  { %861 = vmatpush1.msra.mxu1 %v2268_v24 }
 0x416   :  { %862 = vmatprep.subr.mxu1 %v2271_v27 }
 0x417   :  { %863 = vmatpush1.msra.mxu1 %v2274_v31 }
 0x418   :  { %864 = vmatprep.subr.mxu1 %v2277_v35 }
 0x419   :  { %865 = vmatpush2.msra.mxu1 %v2280_v39 }
 0x41a   :  { %866 = vmatprep.subr.mxu1 %v2283_v51 }
 0x41b   :  { %867 = vmatpush2.msra.mxu1 %v2286_v55 }
 0x41c   :  { %868 = vmatprep.subr.mxu1 %v2289_v57 }
 0x41d   :  { %869 = vmatpush2.msra.mxu1 %v2292_v4 }
 0x41e   :  { %870 = vmatprep.subr.mxu1 %v2295_v53 }
 0x41f   :  { %871 = vmatpush2.msra.mxu1 %v2298_v6 }
 0x420   :  { %872 = vmatprep.subr.mxu1 %v2301_v29 }
 0x421   :  { %873 = vmatpush2.msra.mxu1 %v2304_v41 }
 0x422   :  { %874 = vmatprep.subr.mxu1 %v2307_v7 }
 0x423   :  { %875 = vmatpush2.msra.mxu1 %v2310_v8 }
 0x424   :  { %876 = vmatprep.subr.mxu1 %v2313_v28 }
 0x425   :  { %877 = vmatpush2.msra.mxu1 %v2316_v46 }
 0x426   :  { %878 = vmatprep.subr.mxu1 %v2319_v48 }
 0x427   :  { %879 = vmatpush2.msra.mxu1 %v2322_v50 }
 0x428   :  { %880 = vmatprep.subr.mxu1 %v2325_v52 }
 0x429   :  { %881 = vmatpush2.msra.mxu1 %v2328_v54 }
 0x42a   :  { %882 = vmatprep.subr.mxu1 %v2331_v56 }
 0x42b   :  { %883 = vmatpush2.msra.mxu1 %v2334_v60 }
 0x42c   :  { %884 = vmatprep.subr.mxu1 %v2582_v9 }
 0x42d   :  { %885 = vmatpush2.msra.mxu1 %v2583_v10  ;;  %v2601_v10 = vld [vmem:[#allocation39_spill] sm:$0xff] }
 0x42e   :  { %886 = vmatprep.subr.mxu1 %v2584_v13 }
 0x42f   :  { %887 = vmatpush2.msra.mxu1 %v2585_v14 }
 0x430   :  { %888 = vmatprep.subr.mxu1 %v2586_v15 }
 0x431   :  { %889 = vmatpush2.msra.mxu1 %v2587_v17 }
 0x432   :  { %890 = vmatprep.subr.mxu1 %v2588_v18 }
 0x433   :  { %891 = vmatpush2.msra.mxu1 %v2589_v19  ;;  %v1346_v19 = vld [vmem:[#allocation6 + $0x130] sm:$0xff] }
 0x434   :  { %892 = vmatprep.subr.mxu1 %v2590_v20  ;;  %v1347_v20 = vld [vmem:[#allocation6 + $0x128] sm:$0xff] }
 0x435   :  { %893 = vmatpush2.msra.mxu1 %v2591_v23  ;;  %v1348_v23 = vld [vmem:[#allocation6 + $0x120] sm:$0xff] }
 0x436   :  { %894 = vmatprep.subr.mxu1 %v2592_v25  ;;  %v1349_v25 = vld [vmem:[#allocation6 + $0x118] sm:$0xff] }
 0x437   :  { %895 = vmatpush2.msra.mxu1 %v2575_v59  ;;  %v1345_v59 = vld [vmem:[#allocation6 + $0x138] sm:$0xff] }
 0x4b8   :  { %v744_v9 = vpop.f32.mrf.mxu1 }
 0x4b9   :  { %v749_v13 = vadd.f32 %v744_v9, %v2601_v10  ;;  %v2610_v9 = vld [vmem:[#allocation16_spill] sm:$0xff]  ;;  %v2611_v10 = vld [vmem:[#allocation22_spill] sm:$0xff] }
 0x4ba   :  { %v746_v14 = vpop.f32.mrf.mxu1 }
 0x4bb   :  { %v750_v15 = vadd.f32 %v746_v14, %v2602_v58  ;;  %v1014_v58 = vld [vmem:[#allocation8 + $0xe0] sm:$0xff] }
 0x4bd   :  { %1273 = vtanh.f32 %v750_v15  ;;  %v2613_v15 = vld [vmem:[#allocation45_spill] sm:$0xff] }
 0x4be   :  { %1275 = vtanh.f32 %v749_v13  ;;  %v2612_v13 = vld [vmem:[#allocation23_spill] sm:$0xff] }
 0x4ca   :  { %v2351_v17 = vpop.eup %1273 }
 0x4cb   :  { %v2353_v18 = vpop.eup %1275  ;;  %819 = vmatprep.mubr.f32.mxu0 %v2351_v17 }
 0x4cc   :  { %820 = vmatmul.mubr.f32.vlgmr.msra.gmra.mxu0 %v2353_v18 }
 0x4cd   :  { %910 = vmatpush1.msra.mxu0 %v2112_v2  ;;  %v1352_v2 = vld [vmem:[#allocation6 + $0x100] sm:$0xff] }
 0x4ce   :  { %911 = vmatprep.subr.mxu0 %v2115_v22  ;;  %v1017_v22 = vld [vmem:[#allocation8 + $0xf8] sm:$0xff] }
 0x4cf   :  { %912 = vmatpush1.msra.mxu0 %v2118_v43  ;;  %1187 = vmatprep.subr.mxu1 %v1017_v22 }
 0x4d0   :  { %913 = vmatprep.subr.mxu0 %v2121_v61  ;;  %v2603_v61 = vld [vmem:[#allocation43_spill] sm:$0xff] }
 0x4d1   :  { %914 = vmatpush1.msra.mxu0 %v2124_v16 }
 0x4d2   :  { %915 = vmatprep.subr.mxu0 %v2127_v45 }
 0x4d3   :  { %916 = vmatpush1.msra.mxu0 %v2130_v49  ;;  %v2604_v49 = vld [vmem:[#allocation44_spill] sm:$0xff] }
 0x4d4   :  { %917 = vmatprep.subr.mxu0 %v2133_v11 }
 0x4d5   :  { %918 = vmatpush1.msra.mxu0 %v2136_v37 }
 0x4d6   :  { %919 = vmatprep.subr.mxu0 %v2139_v1  ;;  %v1001_v1 = vld [vmem:[#allocation8 + $0x78] sm:$0xff] }
 0x4d7   :  { %920 = vmatpush1.msra.mxu0 %v2142_v30 }
 0x4d8   :  { %921 = vmatprep.subr.mxu0 %v2145_v32  ;;  %v1016_v32 = vld [vmem:[#allocation8 + $0xf0] sm:$0xff] }
 0x4d9   :  { %922 = vmatpush1.msra.mxu0 %v2148_v34  ;;  %v1000_v34 = vld [vmem:[#allocation8 + $0x70] sm:$0xff] }
 0x4da   :  { %923 = vmatprep.subr.mxu0 %v2151_v36  ;;  %v2605_v36 = vld [vmem:[#allocation41_spill] sm:$0xff] }
 0x4db   :  { %924 = vmatpush1.msra.mxu0 %v2154_v38  ;;  %v1015_v38 = vld [vmem:[#allocation8 + $0xe8] sm:$0xff] }
 0x4dc   :  { %925 = vmatprep.subr.mxu0 %v2157_v40  ;;  %v999_v40 = vld [vmem:[#allocation8 + $0x68] sm:$0xff] }
 0x4dd   :  { %926 = vmatpush1.msra.mxu0 %v2160_v63  ;;  %v1344_v63 = vld [vmem:[#allocation6 + $0x140] sm:$0xff] }
 0x4de   :  { %927 = vmatprep.subr.mxu0 %v2163_v33  ;;  %v1342_v33 = vld [vmem:[#allocation6 + $0x150] sm:$0xff] }
 0x4df   :  { %928 = vmatpush1.msra.mxu0 %v2166_v44  ;;  %v1351_v44 = vld [vmem:[#allocation6 + $0x108] sm:$0xff] }
 0x4e0   :  { %929 = vmatprep.subr.mxu0 %v2169_v42  ;;  %v1350_v42 = vld [vmem:[#allocation6 + $0x110] sm:$0xff] }
 0x4e1   :  { %930 = vmatpush1.msra.mxu0 %v2172_v47  ;;  %v1341_v47 = vld [vmem:[#allocation6 + $0x158] sm:$0xff] }
 0x4e2   :  { %931 = vmatprep.subr.mxu0 %v2175_v26  ;;  %v1343_v26 = vld [vmem:[#allocation6 + $0x148] sm:$0xff] }
 0x4e3   :  { %932 = vmatpush1.msra.mxu0 %v2250_v62  ;;  %v1013_v62 = vld [vmem:[#allocation8 + $0xd8] sm:$0xff] }
 0x4e4   :  { %933 = vmatprep.subr.mxu0 %v2253_v0  ;;  %v997_v0 = vld [vmem:[#allocation8 + $0x58] sm:$0xff] }
 0x4e5   :  { %934 = vmatpush1.msra.mxu0 %v2256_v3  ;;  %v1012_v3 = vld [vmem:[#allocation8 + $0xd0] sm:$0xff] }
 0x4e6   :  { %935 = vmatprep.subr.mxu0 %v2259_v5  ;;  %v996_v5 = vld [vmem:[#allocation8 + $0x50] sm:$0xff] }
 0x4e7   :  { %936 = vmatpush1.msra.mxu0 %v2262_v12  ;;  %v1011_v12 = vld [vmem:[#allocation8 + $0xc8] sm:$0xff] }
 0x4e8   :  { %937 = vmatprep.subr.mxu0 %v2265_v21  ;;  %v995_v21 = vld [vmem:[#allocation8 + $0x48] sm:$0xff] }
 0x4e9   :  { %938 = vmatpush1.msra.mxu0 %v2268_v24  ;;  %v1010_v24 = vld [vmem:[#allocation8 + $0xc0] sm:$0xff] }
 0x4ea   :  { %939 = vmatprep.subr.mxu0 %v2271_v27  ;;  %v994_v27 = vld [vmem:[#allocation8 + $0x40] sm:$0xff] }
 0x4eb   :  { %940 = vmatpush1.msra.mxu0 %v2274_v31  ;;  %v1009_v31 = vld [vmem:[#allocation8 + $0xb8] sm:$0xff] }
 0x4ec   :  { %941 = vmatprep.subr.mxu0 %v2277_v35  ;;  %v993_v35 = vld [vmem:[#allocation8 + $0x38] sm:$0xff] }
 0x4ed   :  { %942 = vmatpush2.msra.mxu0 %v2280_v39  ;;  %v1008_v39 = vld [vmem:[#allocation8 + $0xb0] sm:$0xff] }
 0x4ee   :  { %943 = vmatprep.subr.mxu0 %v2283_v51  ;;  %v992_v51 = vld [vmem:[#allocation8 + $0x30] sm:$0xff] }
 0x4ef   :  { %944 = vmatpush2.msra.mxu0 %v2286_v55  ;;  %v1007_v55 = vld [vmem:[#allocation8 + $0xa8] sm:$0xff] }
 0x4f0   :  { %945 = vmatprep.subr.mxu0 %v2289_v57  ;;  %v991_v57 = vld [vmem:[#allocation8 + $0x28] sm:$0xff] }
 0x4f1   :  { %946 = vmatpush2.msra.mxu0 %v2292_v4  ;;  %v1006_v4 = vld [vmem:[#allocation8 + $0xa0] sm:$0xff] }
 0x4f2   :  { %947 = vmatprep.subr.mxu0 %v2295_v53  ;;  %v990_v53 = vld [vmem:[#allocation8 + $0x20] sm:$0xff] }
 0x4f3   :  { %948 = vmatpush2.msra.mxu0 %v2298_v6  ;;  %v1005_v6 = vld [vmem:[#allocation8 + $0x98] sm:$0xff] }
 0x4f4   :  { %949 = vmatprep.subr.mxu0 %v2301_v29  ;;  %v989_v29 = vld [vmem:[#allocation8 + $0x18] sm:$0xff] }
 0x4f5   :  { %950 = vmatpush2.msra.mxu0 %v2304_v41  ;;  %v1004_v41 = vld [vmem:[#allocation8 + $0x90] sm:$0xff] }
 0x4f6   :  { %951 = vmatprep.subr.mxu0 %v2307_v7  ;;  %v988_v7 = vld [vmem:[#allocation8 + $0x10] sm:$0xff] }
 0x4f7   :  { %952 = vmatpush2.msra.mxu0 %v2310_v8  ;;  %v1003_v8 = vld [vmem:[#allocation8 + $0x88] sm:$0xff] }
 0x4f8   :  { %953 = vmatprep.subr.mxu0 %v2313_v28  ;;  %v987_v28 = vld [vmem:[#allocation8 + $0x8] sm:$0xff] }
 0x4f9   :  { %954 = vmatpush2.msra.mxu0 %v2316_v46  ;;  %v1002_v46 = vld [vmem:[#allocation8 + $0x80] sm:$0xff] }
 0x4fa   :  { %955 = vmatprep.subr.mxu0 %v2319_v48  ;;  %v986_v48 = vld [vmem:[#allocation8] sm:$0xff] }
 0x4fb   :  { %956 = vmatpush2.msra.mxu0 %v2322_v50  ;;  %v2606_v50 = vld [vmem:[#allocation42_spill] sm:$0xff] }
 0x4fc   :  { %957 = vmatprep.subr.mxu0 %v2325_v52  ;;  %v2607_v52 = vld [vmem:[#allocation18_spill] sm:$0xff] }
 0x4fd   :  { %958 = vmatpush2.msra.mxu0 %v2328_v54  ;;  %v2608_v54 = vld [vmem:[#allocation19_spill] sm:$0xff] }
 0x4fe   :  { %959 = vmatprep.subr.mxu0 %v2331_v56  ;;  %v2609_v56 = vld [vmem:[#allocation35_spill] sm:$0xff] }
 0x4ff   :  { %960 = vmatpush2.msra.mxu0 %v2334_v60  ;;  %v998_v60 = vld [vmem:[#allocation8 + $0x60] sm:$0xff] }
 0x500   :  { %961 = vmatprep.subr.mxu0 %v1341_v47 }
 0x501   :  { %962 = vmatpush2.msra.mxu0 %v1342_v33 }
 0x502   :  { %963 = vmatprep.subr.mxu0 %v1343_v26  ;;  %v2614_v26 = vld [vmem:[#allocation46_spill] sm:$0xff] }
 0x503   :  { %964 = vmatpush2.msra.mxu0 %v1344_v63 }
 0x504   :  { %965 = vmatprep.subr.mxu0 %v1345_v59 }
 0x505   :  { %966 = vmatpush2.msra.mxu0 %v1346_v19 }
 0x506   :  { %967 = vmatprep.subr.mxu0 %v1347_v20 }
 0x507   :  { %968 = vmatpush2.msra.mxu0 %v1348_v23 }
 0x508   :  { %969 = vmatprep.subr.mxu0 %v1349_v25 }
 0x509   :  { %970 = vmatpush2.msra.mxu0 %v1350_v42 }
 0x50a   :  { %971 = vmatprep.subr.mxu0 %v1351_v44 }
 0x50b   :  { %972 = vmatpush2.msra.mxu0 %v1352_v2 }
 0x58c   :  { %v821_v43 = vpop.f32.mrf.mxu0 }
 0x58d   :  { %v826_v16 = vadd.f32 %v821_v43, %v2603_v61 }
 0x58e   :  { %v823_v45 = vpop.f32.mrf.mxu0 }
 0x58f   :  { %v827_v11 = vadd.f32 %v823_v45, %v2604_v49 }
 0x591   :  { %1277 = vtanh.f32 %v827_v11 }
 0x592   :  { %1279 = vtanh.f32 %v826_v16 }
 0x59e   :  { %v2410_v37 = vpop.eup %1277 }
 0x59f   :  { %v2412_v30 = vpop.eup %1279  ;;  %896 = vmatprep.mubr.f32.mxu1 %v2410_v37 }
 0x5a0   :  { %897 = vmatmul.mubr.f32.vlgmr.msra.gmra.mxu1 %v2412_v30 }
 0x5a1   :  { %1188 = vmatpush3.msra.mxu1 %v1001_v1  ;;  %1089 = vmatprep.mubr.f32.mxu1 %v2605_v36 }
 0x5a2   :  { %1189 = vmatprep.subr.mxu1 %v1016_v32 }
 0x5a3   :  { %1190 = vmatpush3.msra.mxu1 %v1000_v34 }
 0x5a4   :  { %1191 = vmatprep.subr.mxu1 %v1015_v38 }
 0x5a5   :  { %1192 = vmatpush3.msra.mxu1 %v999_v40 }
 0x5a6   :  { %1193 = vmatprep.subr.mxu1 %v1014_v58 }
 0x5a7   :  { %1194 = vmatpush3.msra.mxu1 %v998_v60 }
 0x5a8   :  { %1195 = vmatprep.subr.mxu1 %v1013_v62 }
 0x5a9   :  { %1196 = vmatpush3.msra.mxu1 %v997_v0 }
 0x5aa   :  { %1197 = vmatprep.subr.mxu1 %v1012_v3  ;;  %v2615_v3 = vld [vmem:[#allocation20_spill] sm:$0xff] }
 0x5ab   :  { %1198 = vmatpush3.msra.mxu1 %v996_v5  ;;  %v2616_v5 = vld [vmem:[#allocation17_spill] sm:$0xff] }
 0x5ac   :  { %1199 = vmatprep.subr.mxu1 %v1011_v12  ;;  %v284_v12 = vadd.f32 %v2616_v5, %v2615_v3 }
 0x5ad   :  { %1200 = vmatpush3.msra.mxu1 %v995_v21  ;;  %v2617_v21 = vld [vmem:[#allocation47_spill] sm:$0xff] }
 0x5ae   :  { %1201 = vmatprep.subr.mxu1 %v1010_v24 }
 0x5af   :  { %1202 = vmatpush3.msra.mxu1 %v994_v27 }
 0x5b0   :  { %1203 = vmatprep.subr.mxu1 %v1009_v31 }
 0x5b1   :  { %1204 = vmatpush3.msra.mxu1 %v993_v35 }
 0x5b2   :  { %1205 = vmatprep.subr.mxu1 %v1008_v39 }
 0x5b3   :  { %1206 = vmatpush3.msra.mxu1 %v992_v51 }
 0x5b4   :  { %1207 = vmatprep.subr.mxu1 %v1007_v55 }
 0x5b5   :  { %1208 = vmatpush3.msra.mxu1 %v991_v57 }
 0x5b6   :  { %1209 = vmatprep.subr.mxu1 %v1006_v4 }
 0x5b7   :  { %1210 = vmatpush3.msra.mxu1 %v990_v53 }
 0x5b8   :  { %1211 = vmatprep.subr.mxu1 %v1005_v6 }
 0x5b9   :  { %1212 = vmatpush3.msra.mxu1 %v989_v29 }
 0x5ba   :  { %1213 = vmatprep.subr.mxu1 %v1004_v41 }
 0x5bb   :  { %1214 = vmatpush3.msra.mxu1 %v988_v7 }
 0x5bc   :  { %1215 = vmatprep.subr.mxu1 %v1003_v8 }
 0x5bd   :  { %1216 = vmatpush3.msra.mxu1 %v987_v28 }
 0x5be   :  { %1217 = vmatprep.subr.mxu1 %v1002_v46 }
 0x5bf   :  { %1218 = vmatpush3.msra.mxu1 %v986_v48 }
 0x5c0   :  { %1090 = vmatmul.mubr.f32.vlgmr.msra.gmra.mxu1 %v2606_v50 }
 0x5c1   :  { %1094 = vmatprep.mubr.f32.mxu1 %v2607_v52 }
 0x5c4   :  { %1095 = vmatmul.mubr.f32.gmra.mxu1 %v2608_v54 }
 0x5c5   :  { %1099 = vmatprep.mubr.f32.mxu1 %v2609_v56 }
 0x5c8   :  { %1100 = vmatmul.mubr.f32.gmra.mxu1 %v2610_v9 }
 0x5c9   :  { %1104 = vmatprep.mubr.f32.mxu1 %v2611_v10 }
 0x5cc   :  { %1105 = vmatmul.mubr.f32.gmra.mxu1 %v2612_v13 }
 0x5cd   :  { %1109 = vmatprep.mubr.f32.mxu1 %v2351_v17 }
 0x5d0   :  { %1110 = vmatmul.mubr.f32.gmra.mxu1 %v2353_v18  ;;  %v2433_v18 = vld [vmem:[%s2461_s6] ss:$0 sm:$0xff]  ;;  %s1471_s6 = smov [#allocation10]  }
 0x5d1   :  { %1114 = vmatprep.mubr.f32.mxu1 %v2410_v37  ;;  %s1156_s21 = sshll.u32 %s1471_s6, 4  ;;  %s1157_s21 = int_to_ptr.vmem [resolvable:$true] %s1156_s21 }
 0x5d2   :  { %s1413_s22 = scalar_lea.vmem %s1157_s21, 256  ;;  %p1418_p2 = scmp.lt.s32.totalorder %s1157_s21, %s1157_s21 }
 0x5d3   :  { %p1414_p1 = scmp.ne.s32.totalorder %s1157_s21, %s1413_s22  ;;  %p1419_p3 = scmp.lt.s32.totalorder %s1413_s22, %s1413_s22 }
 0x5d4   :  { %1115 = vmatmul.mubr.f32.gmra.mxu1 %v2412_v30 }
 0x5d5   :  { %p1420_p4 = por %p1419_p3, %p1418_p2 }
 0x5d7   :  { %p1421_p5 = pnand %p1420_p4, %p1414_p1 }
 0x660   :  { %v898_v14 = vpop.f32.mrf.mxu1 }
 0x661   :  { %v903_v47 = vadd.f32 %v898_v14, %v2613_v15 }
 0x662   :  { %v900_v33 = vpop.f32.mrf.mxu1 }
 0x663   :  { %v904_v63 = vadd.f32 %v900_v33, %v2614_v26 }
 0x665   :  { %1281 = vtanh.f32 %v904_v63 }
 0x666   :  { %1283 = vtanh.f32 %v903_v47 }
 0x672   :  { %v1282_v59 = vpop.eup %1281 }
 0x673   :  { %v1284_v19 = vpop.eup %1283  ;;  %973 = vmatprep.mubr.f32.mxu0 %v1282_v59  ;;  %1119 = vmatprep.mubr.f32.mxu1 %v1282_v59 }
 0x674   :  { %974 = vmatmul.mubr.f32.vlgmr.msra.gmra.mxu0 %v1284_v19  ;;  %1120 = vmatmul.mubr.f32.gmra.mxu1 %v1284_v19 }
 0x680   :  { %v1219_v17 = vpop.f32.mrf.mxu1 }
 0x682   :  { %v1220_v20 = vpop.f32.mrf.mxu1 }
 0x683   :  { %v1221_v23 = vadd.f32 %v1220_v20, %v1219_v17 }
 0x684   :  { %v1222_v25 = vpop.f32.mrf.mxu1 }
 0x685   :  { %v1092_v42 = vadd.f32 %v1221_v23, %v2433_v18 }
 0x686   :  { %v1223_v44 = vpop.f32.mrf.mxu1 }
 0x687   :  { %1130 = vst [vmem:[#allocation9] sm:$0xff] %v1092_v42  ;;  %v1224_v2 = vadd.f32 %v1223_v44, %v1222_v25 }
 0x688   :  { %v1225_v22 = vpop.f32.mrf.mxu1 }
 0x689   :  { %v1097_v43 = vadd.f32 %v1224_v2, %v2433_v18 }
 0x68a   :  { %v1226_v61 = vpop.f32.mrf.mxu1 }
 0x68b   :  { %1131 = vst [vmem:[#allocation9 + $0x8] sm:$0xff] %v1097_v43  ;;  %v1227_v16 = vadd.f32 %v1226_v61, %v1225_v22 }
 0x68c   :  { %v1228_v45 = vpop.f32.mrf.mxu1 }
 0x68d   :  { %v1102_v49 = vadd.f32 %v1227_v16, %v2433_v18 }
 0x68e   :  { %v1229_v11 = vpop.f32.mrf.mxu1 }
 0x68f   :  { %1132 = vst [vmem:[#allocation9 + $0x10] sm:$0xff] %v1102_v49  ;;  %v1230_v37 = vadd.f32 %v1229_v11, %v1228_v45 }
 0x690   :  { %v1231_v1 = vpop.f32.mrf.mxu1 }
 0x691   :  { %v1107_v30 = vadd.f32 %v1230_v37, %v2433_v18 }
 0x692   :  { %v1232_v32 = vpop.f32.mrf.mxu1 }
 0x693   :  { %1133 = vst [vmem:[#allocation9 + $0x18] sm:$0xff] %v1107_v30  ;;  %v1233_v34 = vadd.f32 %v1232_v32, %v1231_v1 }
 0x694   :  { %v1234_v36 = vpop.f32.mrf.mxu1 }
 0x695   :  { %v1112_v38 = vadd.f32 %v1233_v34, %v2433_v18 }
 0x696   :  { %v1235_v40 = vpop.f32.mrf.mxu1 }
 0x697   :  { %1134 = vst [vmem:[#allocation9 + $0x20] sm:$0xff] %v1112_v38  ;;  %v1236_v58 = vadd.f32 %v1235_v40, %v1234_v36 }
 0x699   :  { %v1117_v60 = vadd.f32 %v1236_v58, %v2433_v18 }
 0x69b   :  { %1135 = vst [vmem:[#allocation9 + $0x28] sm:$0xff] %v1117_v60 }
 0x734   :  { %v975_v62 = vpop.f32.mrf.mxu0  ;;  %v1237_v0 = vpop.f32.mrf.mxu1 }
 0x735   :  { %v980_v24 = vadd.f32 %v975_v62, %v2617_v21 }
 0x736   :  { %v977_v27 = vpop.f32.mrf.mxu0  ;;  %v1238_v31 = vpop.f32.mrf.mxu1 }
 0x737   :  { %1285 = vtanh.f32 %v980_v24  ;;  %v981_v35 = vadd.f32 %v977_v27, %v284_v12  ;;  %v1239_v39 = vadd.f32 %v1238_v31, %v1237_v0 }
 0x739   :  { %1287 = vtanh.f32 %v981_v35  ;;  %v1122_v51 = vadd.f32 %v1239_v39, %v2433_v18 }
 0x73b   :  { %1136 = vst [vmem:[#allocation9 + $0x30] sm:$0xff] %v1122_v51 }
 0x744   :  { %v1286_v55 = vpop.eup %1285 }
 0x745   :  { %984 = vst [vmem:[#allocation10] sm:$0xff] %v1286_v55 }
 0x746   :  { %v1288_v57 = vpop.eup %1287 }
 0x747   :  { %985 = vst [vmem:[#allocation10 + $0x8] sm:$0xff] %v1288_v57  ;;  %1124 = vmatprep.mubr.f32.mxu1 %v1288_v57 }
 0x748   :  { %1125 = vmatmul.mubr.f32.gmra.mxu1 %v1286_v55 }
 0x749   :  { %1424 = shalt.err (!%p1421_p5)
}
 0x74a   :  { %1159 = dma.vmem_to_hbm [thread:$0]  %s1157_s21, 256, %s2463_s8, [#allocation11]  }
 0x74b   :  { %s1472_s24 = smov [#allocation9]  }
 0x74c   :  { %s1143_s25 = sshll.u32 %s1472_s24, 4  ;;  %s1144_s25 = int_to_ptr.vmem [resolvable:$true] %s1143_s25 }
 0x74d   :  { %s1433_s5 = scalar_lea.vmem %s1144_s25, 1024  ;;  %p1438_p7 = scmp.lt.s32.totalorder %s1144_s25, %s1144_s25 }
 0x74e   :  { %p1434_p6 = scmp.ne.s32.totalorder %s1144_s25, %s1433_s5  ;;  %p1439_p8 = scmp.lt.s32.totalorder %s1433_s5, %s1433_s5 }
 0x750   :  { %p1440_p9 = por %p1439_p8, %p1438_p7 }
 0x752   :  { %p1441_p10 = pnand %p1440_p9, %p1434_p6 }
 0x808   :  { %v1240_v4 = vpop.f32.mrf.mxu1 }
 0x80a   :  { %v1241_v53 = vpop.f32.mrf.mxu1 }
 0x80b   :  { %v1242_v6 = vadd.f32 %v1241_v53, %v1240_v4 }
 0x80d   :  { %v1127_v29 = vadd.f32 %v1242_v6, %v2433_v18 }
 0x80f   :  { %1137 = vst [vmem:[#allocation9 + $0x38] sm:$0xff] %v1127_v29 }
 0x810   :  { %1444 = shalt.err (!%p1441_p10)
}
 0x811   :  { %1149 = dma.vmem_to_hbm [thread:$0]  %s1144_s25, 1024, %s2462_s7, [#allocation5], %s1466_s3, %s1466_s3, %s1467_s20  }
 0x812   :  { %1457 = dma.done.wait [#allocation5], 1024  }
 0x813   :  { %1458 = vsyncadd [#allocation5], 4294966272 }
 0x814   :  { %1459 = dma.done.wait [#allocation11], 256  }
 0x815   :  { %1460 = vsyncadd [#allocation11], 4294967040 }
 0x816   :  { %1166 = vsyncpa [#allocation4], 1 }
 0x817   :  { %1167 = vsyncpa [#allocation7], 1 }
 0x818   :  { %1168 = vsyncpa [#allocation5], 1 }
 0x819   :  { %1169 = vsyncpa [#allocation11], 1 }

</bundles_post_ra>
